<compile_context>
chip_gen: v5e
topology: v5e:2x2
jax: 0.10.0
libtpu: 0.0.40
codegen_flags: <defaults>
</compile_context>

<pallas_src>
import numpy as np
import jax
import jax.numpy as jnp
from jax.experimental import pallas as pl
from jax.experimental.pallas import tpu as pltpu


# ---------------------------------------------------------------------------
# Host-side helpers (mask construction and the pure-JAX reference oracle).
# ---------------------------------------------------------------------------
def window_partition_nhwc(x, ws):
    # x: (B, H, W, C) -> (B * nH * nW, ws*ws, C)
    B, H, W, C = x.shape
    x = x.reshape(B, H // ws, ws, W // ws, ws, C)
    x = x.transpose(0, 1, 3, 2, 4, 5)
    return x.reshape(-1, ws * ws, C)


def window_reverse_nhwc(windows, ws, H, W):
    # windows: (B * nH * nW, ws*ws, C) -> (B, H, W, C)
    B = windows.shape[0] // ((H * W) // (ws * ws))
    x = windows.reshape(B, H // ws, W // ws, ws, ws, -1)
    x = x.transpose(0, 1, 3, 2, 4, 5)
    return x.reshape(B, H, W, -1)


def build_attn_mask(H, W, ws, shift):
    """Per-window SW-MSA mask exactly as in SwinCrossAttention.__init__: (nW, N, N)."""
    N = ws * ws
    nW = (H // ws) * (W // ws)
    if shift == 0:
        return np.zeros((nW, N, N), np.float32)
    img_mask = np.zeros((1, H, W, 1), np.float32)
    slices = (slice(0, -ws), slice(-ws, -shift), slice(-shift, None))
    cnt = 0
    for hs in slices:
        for wsl in slices:
            img_mask[:, hs, wsl, :] = cnt
            cnt += 1
    mw = np.asarray(window_partition_nhwc(img_mask, ws)).reshape(-1, N)   # (nW, N)
    attn_mask = mw[:, None, :] - mw[:, :, None]                           # (nW, N, N)
    return np.where(attn_mask != 0, -100.0, 0.0).astype(np.float32)


def build_raster_group_mask(H, W, ws, shift, batch_fold):
    """(T, T) additive mask, T = batch_fold * H * W, for raster-ordered tokens.

    The cyclic shift + window-partition permutation of the PyTorch module is
    folded into this constant: a pair of raster tokens gets the original Swin
    shift-mask value when they land in the same shifted window, and -1e9
    otherwise (exp underflows to exactly 0 in fp32 -> identical to never
    attending across windows).  Batch elements folded into the token axis get
    their own -1e9-separated diagonal block.
    """
    N = ws * ws
    nW = (H // ws) * (W // ws)
    L = H * W
    # window-order index p -> original raster index perm[p]
    perm = np.empty((L,), np.int64)
    p = 0
    for wh in range(H // ws):
        for ww in range(W // ws):
            for ih in range(ws):
                for iw in range(ws):
                    h0 = (wh * ws + ih + shift) % H
                    w0 = (ww * ws + iw + shift) % W
                    perm[p] = h0 * W + w0
                    p += 1
    wm = build_attn_mask(H, W, ws, shift)                      # (nW, N, N)
    mask_win = np.full((L, L), -1e9, np.float32)
    for w in range(nW):
        mask_win[w * N:(w + 1) * N, w * N:(w + 1) * N] = wm[w]
    mask_raster = np.full((L, L), -1e9, np.float32)
    mask_raster[np.ix_(perm, perm)] = mask_win                 # re-index to raster order
    T = batch_fold * L
    mask_group = np.full((T, T), -1e9, np.float32)
    for j in range(batch_fold):
        mask_group[j * L:(j + 1) * L, j * L:(j + 1) * L] = mask_raster
    return mask_group


# ---------------------------------------------------------------------------
# Pallas kernel + wrapper.
# ---------------------------------------------------------------------------
def make_swin_cross_attention(dim, num_heads, window_size, shift_size, input_resolution):
    H, W = input_resolution
    ws = window_size
    if min(input_resolution) <= ws:
        shift_size = 0
        ws = min(input_resolution)
    assert 0 <= shift_size < ws
    C = dim
    L = H * W
    head_dim = C // num_heads
    scale = head_dim ** (-0.5)
    f32 = jnp.float32
    bf16 = jnp.bfloat16

    def kernel(x1_ref, x2_ref, mask_ref, wb_ref, fp_ref, o_ref):
        # Activations: channel-major, raster token order, batch folded into the
        # (lane-dense) token axis -> (C, T).
        x1 = x1_ref[0]                        # rescaled  (k / v source)
        x2 = x2_ref[0]                        # rescaler  (q source)

        # fp32 parameter slab (3C, 4):
        #   col 0: qkv bias (rescaled)        col 1: qkv bias (rescaler, q rows pre-scaled)
        #   col 2: [gamma1; beta1; gamma2]    col 3: [beta2; bproj; 0]
        bq1 = fp_ref[:, 0:1]
        bq2 = fp_ref[:, 1:2]
        g1 = fp_ref[0:C, 2:3]
        b1 = fp_ref[C:2 * C, 2:3]
        g2 = fp_ref[2 * C:3 * C, 2:3]
        b2 = fp_ref[0:C, 3:4]
        bproj = fp_ref[C:2 * C, 3:4]

        def layer_norm_cm(x, g, b):           # LayerNorm over channels, fp32
            mu = jnp.mean(x, axis=0, keepdims=True)
            xc = x - mu
            var = jnp.mean(xc * xc, axis=0, keepdims=True)
            return xc * jax.lax.rsqrt(var + 1e-5) * g + b

        x1n = layer_norm_cm(x1, g1, b1).astype(bf16)
        x2n = layer_norm_cm(x2, g2, b2).astype(bf16)

        # Fused QKV projections (bf16 operands, fp32 accumulation):
        # (3C, C) @ (C, T) -> (3C, T).  1/sqrt(head_dim) is already folded into
        # the q rows of wb_ref[3C:6C] / bq2 on the host.
        qkv1 = jnp.dot(wb_ref[0:3 * C, :], x1n, preferred_element_type=f32) + bq1
        qkv2 = jnp.dot(wb_ref[3 * C:6 * C, :], x2n, preferred_element_type=f32) + bq2

        # same_key_query=False: q from rescaler, k and v from rescaled.
        # Keep k / v in (heads, head_dim, T); only q needs one small transpose
        # so both attention einsums are MXU-canonical batched matmuls.
        q = jnp.swapaxes(qkv2[0:C, :].reshape(num_heads, head_dim, -1), 1, 2)
        k = qkv1[C:2 * C, :].reshape(num_heads, head_dim, -1)
        v = qkv1[2 * C:3 * C, :].reshape(num_heads, head_dim, -1)

        # Scores: heads (and folded batch, via the block-diagonal mask) batch dim.
        s = jnp.einsum('hnd,hdm->hnm', q.astype(bf16), k.astype(bf16),
                       preferred_element_type=f32)             # (heads, T, T)
        s = s + mask_ref[...][None, :, :]                      # fp32 mask add
        s = s - jnp.max(s, axis=-1, keepdims=True)
        probs = jnp.exp(s)
        probs = probs * pl.reciprocal(jnp.sum(probs, axis=-1, keepdims=True),
                                      approx=True)

        # Attention output directly in (heads, head_dim, T): rhs-transposed
        # batched matmul; head merge back to (C, T) is a free reshape.
        o = jnp.einsum('hdm,hnm->hdn', v.astype(bf16), probs.astype(bf16),
                       preferred_element_type=f32)             # (heads, head_dim, T)
        attn_cm = o.reshape(C, -1)                             # (C, T)

        y = jnp.dot(wb_ref[6 * C:7 * C, :], attn_cm.astype(bf16),
                    preferred_element_type=f32) + bproj
        o_ref[0] = y.astype(o_ref.dtype)

    def forward(rescaled, rescaler, params):
        B = rescaled.shape[0]
        # Fold batch into the token axis so the kernel's last dim is >=128
        # lanes.  (On v7x one may cap the fold so the grid keeps >=2 parallel
        # steps; with the demo batch of 4 both conditions hold: bt=2, grid=2.)
        bt = 1
        if L < 128 and 128 % L == 0 and B % (128 // L) == 0:
            bt = 128 // L
        T = bt * L
        groups = B // bt

        mask = jnp.asarray(build_raster_group_mask(H, W, ws, shift_size, bt))

        # Host-side constant folding of the attention scale into the q rows of
        # the rescaler branch (q comes from the rescaler projection).
        q_row_scale = jnp.concatenate(
            [jnp.full((C,), scale, f32), jnp.ones((2 * C,), f32)])
        wqkv1 = params["wqkv"][0]
        wqkv2 = params["wqkv"][1] * q_row_scale[:, None]
        bqkv1 = params["bqkv"][:, 0]
        bqkv2 = params["bqkv"][:, 1] * q_row_scale

        # Pack matmul weights into one bf16 slab and all small fp32 vectors
        # into one fp32 slab (fewer BlockSpecs / DMA descriptors).
        w_slab = jnp.concatenate([wqkv1, wqkv2, params["wproj"]],
                                 axis=0).astype(bf16)            # (7C, C)
        ln = params["ln"]
        col2 = jnp.concatenate([ln[:, 0], ln[:, 1], ln[:, 2]])
        col3 = jnp.concatenate([ln[:, 3], params["bproj"], jnp.zeros((C,), f32)])
        fp_slab = jnp.stack([bqkv1, bqkv2, col2, col3], axis=1)  # (3C, 4)

        def fold(x):   # (B, C, H, W) -> (groups, C, T), raster token order
            x = x.reshape(B, C, L)
            if bt == 1:
                return x
            x = x.reshape(groups, bt, C, L).transpose(0, 2, 1, 3)
            return x.reshape(groups, C, T)

        act_spec = pl.BlockSpec((1, C, T), lambda g: (g, 0, 0))
        grid_spec = pltpu.PrefetchScalarGridSpec(
            num_scalar_prefetch=0,
            grid=(groups,),
            in_specs=[
                act_spec,                                        # rescaled tokens
                act_spec,                                        # rescaler tokens
                pl.BlockSpec((T, T), lambda g: (0, 0)),          # additive mask
                pl.BlockSpec((7 * C, C), lambda g: (0, 0)),      # bf16 weight slab
                pl.BlockSpec((3 * C, 4), lambda g: (0, 0)),      # fp32 vector slab
            ],
            out_specs=act_spec,
        )
        out = pl.pallas_call(
            kernel,
            out_shape=jax.ShapeDtypeStruct((groups, C, T), f32),
            grid_spec=grid_spec,
            compiler_params=pltpu.CompilerParams(
                dimension_semantics=("parallel",)),
        )(fold(rescaled), fold(rescaler), mask, w_slab, fp_slab)

        if bt == 1:
            return out.reshape(B, C, H, W)
        out = out.reshape(groups, C, bt, L).transpose(0, 2, 1, 3)
        return out.reshape(B, C, H, W)

    return forward, dict(ws=ws, shift=shift_size)


# ---------------------------------------------------------------------------
# Pure-JAX fp32 mirror of the PyTorch forward (correctness oracle).
# ---------------------------------------------------------------------------
def reference(rescaled, rescaler, params, dim, num_heads, ws, shift, H, W):
    C = dim
    head_dim = C // num_heads
    scale = head_dim ** (-0.5)
    N = ws * ws
    nW = (H // ws) * (W // ws)
    B = rescaled.shape[0]
    ln_p = params["ln"]

    def ln(x, g, b):
        mu = jnp.mean(x, -1, keepdims=True)
        var = jnp.mean((x - mu) ** 2, -1, keepdims=True)
        return (x - mu) / jnp.sqrt(var + 1e-5) * g + b

    def prep(x, g, b):
        x = jnp.transpose(x, (0, 2, 3, 1))                    # (B, H, W, C)
        x = ln(x, g, b)
        if shift > 0:
            x = jnp.roll(x, (-shift, -shift), axis=(1, 2))
        return window_partition_nhwc(x, ws)                   # (B*nW, N, C)

    xw1 = prep(rescaled, ln_p[:, 0], ln_p[:, 1])
    xw2 = prep(rescaler, ln_p[:, 2], ln_p[:, 3])
    B_ = xw1.shape[0]

    def qkv_fn(x, w, bias):        # w: (3C, C) torch layout, bias: (3C,)
        y = jnp.einsum("bnc,oc->bno", x, w, precision="highest") + bias
        y = y.reshape(B_, N, 3, num_heads, head_dim)
        y = jnp.transpose(y, (2, 0, 3, 1, 4))                 # (3, B_, nh, N, hd)
        return y[0], y[1], y[2]

    _, k1, v1 = qkv_fn(xw1, params["wqkv"][0], params["bqkv"][:, 0])
    q2, _, _ = qkv_fn(xw2, params["wqkv"][1], params["bqkv"][:, 1])
    q, k, v = q2 * scale, k1, v1

    attn = jnp.einsum("bhnd,bhmd->bhnm", q, k, precision="highest")
    mask = jnp.asarray(build_attn_mask(H, W, ws, shift))
    attn = attn.reshape(B, nW, num_heads, N, N) + mask[None, :, None]
    attn = jax.nn.softmax(attn.reshape(B_, num_heads, N, N), axis=-1)
    x = jnp.einsum("bhnm,bhmd->bhnd", attn, v, precision="highest")
    x = jnp.transpose(x, (0, 2, 1, 3)).reshape(B_, N, C)
    x = jnp.einsum("bnc,oc->bno", x, params["wproj"], precision="highest") \
        + params["bproj"]

    x = window_reverse_nhwc(x, ws, H, W)                      # (B, H, W, C)
    if shift > 0:
        x = jnp.roll(x, (shift, shift), axis=(1, 2))
    return jnp.transpose(x, (0, 3, 1, 2))                     # (B, C, H, W)


if __name__ == "__main__":
    # TODO(synk): proj='conv' (depthwise_separable_conv qkv) and RPE (rpe_mode /
    # contextual tables) variants not implemented; the linear / no-RPE path
    # (relative_position_index=None, eval-mode dropout) is what the kernel covers.
    B, C, H, W = 4, 32, 8, 8
    num_heads, window_size, shift_size = 4, 4, 2

    key = jax.random.PRNGKey(0)
    keys = jax.random.split(key, 10)
    rescaled = jax.random.normal(keys[0], (B, C, H, W), jnp.float32)
    rescaler = jax.random.normal(keys[1], (B, C, H, W), jnp.float32)

    s = 1.0 / float(np.sqrt(C))
    params = {
        # LayerNorm params, columns = [gamma1, beta1, gamma2, beta2]
        "ln": jnp.stack([
            1.0 + 0.1 * jax.random.normal(keys[2], (C,), jnp.float32),
            0.1 * jax.random.normal(keys[3], (C,), jnp.float32),
            1.0 + 0.1 * jax.random.normal(keys[4], (C,), jnp.float32),
            0.1 * jax.random.normal(keys[5], (C,), jnp.float32),
        ], axis=1),                                           # (C, 4)
        # qkv Linear weights for (rescaled, rescaler), torch (out=3C, in=C) layout
        "wqkv": s * jax.random.normal(keys[6], (2, 3 * C, C), jnp.float32),
        "bqkv": 0.1 * jax.random.normal(keys[7], (3 * C, 2), jnp.float32),
        # output projection nn.Linear(dim, dim), torch (out, in) layout
        "wproj": s * jax.random.normal(keys[8], (C, C), jnp.float32),
        "bproj": 0.1 * jax.random.normal(keys[9], (C,), jnp.float32),
    }

    forward, cfg = make_swin_cross_attention(C, num_heads, window_size,
                                             shift_size, (H, W))
    out = jax.block_until_ready(forward(rescaled, rescaler, params))

    ref = reference(rescaled, rescaler, params, C, num_heads,
                    cfg["ws"], cfg["shift"], H, W)
    assert out.shape == (B, C, H, W)
    # bf16 matmul operands (fp32 accumulation) and approx reciprocal in the
    # softmax -> tolerance covers bfloat16 rounding; LN/softmax stay fp32.
    max_err = float(jnp.max(jnp.abs(out - ref)))
    rel_err = float(jnp.linalg.norm(out - ref) / jnp.linalg.norm(ref))
    assert rel_err < 3e-2 and max_err < 1e-1, f"max_err={max_err}, rel_err={rel_err}"
    print("KERNEL_OK")
</pallas_src>

<mosaic_0001>
module attributes {stable_mosaic.version = 11 : i64} {
  func.func @kernel(%arg0: i32, %arg1: memref<1x32x128xf32, #tpu.memory_space<vmem>>, %arg2: memref<1x32x128xf32, #tpu.memory_space<vmem>>, %arg3: memref<128x128xf32, #tpu.memory_space<vmem>>, %arg4: memref<224x32xbf16, #tpu.memory_space<vmem>>, %arg5: memref<96x4xf32, #tpu.memory_space<vmem>>, %arg6: memref<1x32x128xf32, #tpu.memory_space<vmem>>) attributes {dimension_semantics = [#tpu.dimension_semantics<parallel>], iteration_bounds = array<i64: 2>, scalar_prefetch = 0 : i64, scratch_operands = 0 : i64, tpu.core_type = #tpu.core_type<tc>, window_params = [{transform_indices = @transform_0, window_bounds = array<i64: 1, 32, 128>}, {transform_indices = @transform_1, window_bounds = array<i64: 1, 32, 128>}, {pipeline_mode = #tpu.pipeline_mode<synchronous>, transform_indices = @transform_2, window_bounds = array<i64: 128, 128>}, {pipeline_mode = #tpu.pipeline_mode<synchronous>, transform_indices = @transform_3, window_bounds = array<i64: 224, 32>}, {pipeline_mode = #tpu.pipeline_mode<synchronous>, transform_indices = @transform_4, window_bounds = array<i64: 96, 4>}, {transform_indices = @transform_5, window_bounds = array<i64: 1, 32, 128>}]} {
    %c0 = arith.constant 0 : index
    %c0_0 = arith.constant 0 : index
    %c0_1 = arith.constant 0 : index
    %0 = vector.load %arg1[%c0, %c0_0, %c0_1] : memref<1x32x128xf32, #tpu.memory_space<vmem>>, vector<1x32x128xf32>
    %1 = vector.shape_cast %0 : vector<1x32x128xf32> to vector<32x128xf32>
    %c0_2 = arith.constant 0 : index
    %c0_3 = arith.constant 0 : index
    %c0_4 = arith.constant 0 : index
    %2 = vector.load %arg2[%c0_2, %c0_3, %c0_4] : memref<1x32x128xf32, #tpu.memory_space<vmem>>, vector<1x32x128xf32>
    %3 = vector.shape_cast %2 : vector<1x32x128xf32> to vector<32x128xf32>
    %c0_5 = arith.constant 0 : index
    %c0_6 = arith.constant 0 : index
    %4 = vector.load %arg5[%c0_5, %c0_6] : memref<96x4xf32, #tpu.memory_space<vmem>>, vector<96x1xf32>
    %c0_7 = arith.constant 0 : index
    %c1 = arith.constant 1 : index
    %5 = vector.load %arg5[%c0_7, %c1] : memref<96x4xf32, #tpu.memory_space<vmem>>, vector<96x1xf32>
    %c0_8 = arith.constant 0 : index
    %c2 = arith.constant 2 : index
    %6 = vector.load %arg5[%c0_8, %c2] : memref<96x4xf32, #tpu.memory_space<vmem>>, vector<32x1xf32>
    %c32 = arith.constant 32 : index
    %c2_9 = arith.constant 2 : index
    %7 = vector.load %arg5[%c32, %c2_9] : memref<96x4xf32, #tpu.memory_space<vmem>>, vector<32x1xf32>
    %c64 = arith.constant 64 : index
    %c2_10 = arith.constant 2 : index
    %8 = vector.load %arg5[%c64, %c2_10] : memref<96x4xf32, #tpu.memory_space<vmem>>, vector<32x1xf32>
    %c0_11 = arith.constant 0 : index
    %c3 = arith.constant 3 : index
    %9 = vector.load %arg5[%c0_11, %c3] : memref<96x4xf32, #tpu.memory_space<vmem>>, vector<32x1xf32>
    %c32_12 = arith.constant 32 : index
    %c3_13 = arith.constant 3 : index
    %10 = vector.load %arg5[%c32_12, %c3_13] : memref<96x4xf32, #tpu.memory_space<vmem>>, vector<32x1xf32>
    %cst = arith.constant dense<0.000000e+00> : vector<128xf32>
    %11 = vector.multi_reduction <add>, %1, %cst [0] : vector<32x128xf32> to vector<128xf32>
    %12 = vector.shape_cast %11 : vector<128xf32> to vector<1x128xf32>
    %cst_14 = arith.constant 3.200000e+01 : f32
    %13 = vector.broadcast %cst_14 : f32 to vector<1x128xf32>
    %14 = arith.divf %12, %13 : vector<1x128xf32>
    %15 = vector.broadcast %14 : vector<1x128xf32> to vector<32x128xf32>
    %16 = arith.subf %1, %15 : vector<32x128xf32>
    %17 = arith.mulf %16, %16 : vector<32x128xf32>
    %cst_15 = arith.constant dense<0.000000e+00> : vector<128xf32>
    %18 = vector.multi_reduction <add>, %17, %cst_15 [0] : vector<32x128xf32> to vector<128xf32>
    %19 = vector.shape_cast %18 : vector<128xf32> to vector<1x128xf32>
    %cst_16 = arith.constant 3.200000e+01 : f32
    %20 = vector.broadcast %cst_16 : f32 to vector<1x128xf32>
    %21 = arith.divf %19, %20 : vector<1x128xf32>
    %cst_17 = arith.constant 9.99999974E-6 : f32
    %22 = vector.broadcast %cst_17 : f32 to vector<1x128xf32>
    %23 = arith.addf %21, %22 : vector<1x128xf32>
    %24 = math.rsqrt %23 : vector<1x128xf32>
    %25 = vector.broadcast %24 : vector<1x128xf32> to vector<32x128xf32>
    %26 = arith.mulf %16, %25 : vector<32x128xf32>
    %27 = vector.broadcast %6 : vector<32x1xf32> to vector<32x128xf32>
    %28 = arith.mulf %26, %27 : vector<32x128xf32>
    %29 = vector.broadcast %7 : vector<32x1xf32> to vector<32x128xf32>
    %30 = arith.addf %28, %29 : vector<32x128xf32>
    %31 = arith.truncf %30 : vector<32x128xf32> to vector<32x128xbf16>
    %cst_18 = arith.constant dense<0.000000e+00> : vector<128xf32>
    %32 = vector.multi_reduction <add>, %3, %cst_18 [0] : vector<32x128xf32> to vector<128xf32>
    %33 = vector.shape_cast %32 : vector<128xf32> to vector<1x128xf32>
    %cst_19 = arith.constant 3.200000e+01 : f32
    %34 = vector.broadcast %cst_19 : f32 to vector<1x128xf32>
    %35 = arith.divf %33, %34 : vector<1x128xf32>
    %36 = vector.broadcast %35 : vector<1x128xf32> to vector<32x128xf32>
    %37 = arith.subf %3, %36 : vector<32x128xf32>
    %38 = arith.mulf %37, %37 : vector<32x128xf32>
    %cst_20 = arith.constant dense<0.000000e+00> : vector<128xf32>
    %39 = vector.multi_reduction <add>, %38, %cst_20 [0] : vector<32x128xf32> to vector<128xf32>
    %40 = vector.shape_cast %39 : vector<128xf32> to vector<1x128xf32>
    %cst_21 = arith.constant 3.200000e+01 : f32
    %41 = vector.broadcast %cst_21 : f32 to vector<1x128xf32>
    %42 = arith.divf %40, %41 : vector<1x128xf32>
    %cst_22 = arith.constant 9.99999974E-6 : f32
    %43 = vector.broadcast %cst_22 : f32 to vector<1x128xf32>
    %44 = arith.addf %42, %43 : vector<1x128xf32>
    %45 = math.rsqrt %44 : vector<1x128xf32>
    %46 = vector.broadcast %45 : vector<1x128xf32> to vector<32x128xf32>
    %47 = arith.mulf %37, %46 : vector<32x128xf32>
    %48 = vector.broadcast %8 : vector<32x1xf32> to vector<32x128xf32>
    %49 = arith.mulf %47, %48 : vector<32x128xf32>
    %50 = vector.broadcast %9 : vector<32x1xf32> to vector<32x128xf32>
    %51 = arith.addf %49, %50 : vector<32x128xf32>
    %52 = arith.truncf %51 : vector<32x128xf32> to vector<32x128xbf16>
    %c0_23 = arith.constant 0 : index
    %c0_24 = arith.constant 0 : index
    %53 = vector.load %arg4[%c0_23, %c0_24] : memref<224x32xbf16, #tpu.memory_space<vmem>>, vector<96x32xbf16>
    %cst_25 = arith.constant dense<0.000000e+00> : vector<96x128xf32>
    %54 = tpu.matmul %53, %31, %cst_25 {dimension_numbers = #tpu.dot_dimension_numbers<[1], [0], [0], [1], [0, 0, 1, 1], [], []>} : vector<96x32xbf16>, vector<32x128xbf16>, vector<96x128xf32> -> vector<96x128xf32>
    %55 = vector.broadcast %4 : vector<96x1xf32> to vector<96x128xf32>
    %56 = arith.addf %54, %55 : vector<96x128xf32>
    %c96 = arith.constant 96 : index
    %c0_26 = arith.constant 0 : index
    %57 = vector.load %arg4[%c96, %c0_26] : memref<224x32xbf16, #tpu.memory_space<vmem>>, vector<96x32xbf16>
    %cst_27 = arith.constant dense<0.000000e+00> : vector<96x128xf32>
    %58 = tpu.matmul %57, %52, %cst_27 {dimension_numbers = #tpu.dot_dimension_numbers<[1], [0], [0], [1], [0, 0, 1, 1], [], []>} : vector<96x32xbf16>, vector<32x128xbf16>, vector<96x128xf32> -> vector<96x128xf32>
    %59 = vector.broadcast %5 : vector<96x1xf32> to vector<96x128xf32>
    %60 = arith.addf %58, %59 : vector<96x128xf32>
    %61 = vector.extract_strided_slice %60 {offsets = [0, 0], sizes = [32, 128], strides = [1, 1]} : vector<96x128xf32> to vector<32x128xf32>
    %62 = vector.shape_cast %61 : vector<32x128xf32> to vector<4x8x128xf32>
    %63 = tpu.transpose %62, [0, 2, 1] : vector<4x8x128xf32> -> vector<4x128x8xf32>
    %64 = vector.extract_strided_slice %56 {offsets = [32, 0], sizes = [32, 128], strides = [1, 1]} : vector<96x128xf32> to vector<32x128xf32>
    %65 = vector.shape_cast %64 : vector<32x128xf32> to vector<4x8x128xf32>
    %66 = vector.extract_strided_slice %56 {offsets = [64, 0], sizes = [32, 128], strides = [1, 1]} : vector<96x128xf32> to vector<32x128xf32>
    %67 = vector.shape_cast %66 : vector<32x128xf32> to vector<4x8x128xf32>
    %68 = arith.truncf %63 : vector<4x128x8xf32> to vector<4x128x8xbf16>
    %69 = arith.truncf %65 : vector<4x8x128xf32> to vector<4x8x128xbf16>
    "tpu.trace_start"() <{level = 10 : i32, message = "hnd,hdm->hnm"}> : () -> ()
    %cst_28 = arith.constant dense<0.000000e+00> : vector<4x128x128xf32>
    %70 = tpu.matmul %68, %69, %cst_28 {dimension_numbers = #tpu.dot_dimension_numbers<[2], [1], [1], [2], [0, 0, 0, 1, 1, 2], [0], [0]>} : vector<4x128x8xbf16>, vector<4x8x128xbf16>, vector<4x128x128xf32> -> vector<4x128x128xf32>
    "tpu.trace_stop"() : () -> ()
    %c0_29 = arith.constant 0 : index
    %c0_30 = arith.constant 0 : index
    %71 = vector.load %arg3[%c0_29, %c0_30] : memref<128x128xf32, #tpu.memory_space<vmem>>, vector<128x128xf32>
    %72 = vector.shape_cast %71 : vector<128x128xf32> to vector<1x128x128xf32>
    %73 = vector.broadcast %72 : vector<1x128x128xf32> to vector<4x128x128xf32>
    %74 = arith.addf %70, %73 : vector<4x128x128xf32>
    %cst_31 = arith.constant dense<0xFF800000> : vector<4x128xf32>
    %75 = vector.multi_reduction <maximumf>, %74, %cst_31 [2] : vector<4x128x128xf32> to vector<4x128xf32>
    %76 = vector.shape_cast %75 : vector<4x128xf32> to vector<4x128x1xf32>
    %77 = vector.broadcast %76 : vector<4x128x1xf32> to vector<4x128x128xf32>
    %78 = arith.subf %74, %77 : vector<4x128x128xf32>
    %79 = math.exp %78 : vector<4x128x128xf32>
    %cst_32 = arith.constant dense<0.000000e+00> : vector<4x128xf32>
    %80 = vector.multi_reduction <add>, %79, %cst_32 [2] : vector<4x128x128xf32> to vector<4x128xf32>
    %81 = vector.shape_cast %80 : vector<4x128xf32> to vector<4x128x1xf32>
    %82 = tpu.reciprocal %81 {approx = true} : vector<4x128x1xf32> -> vector<4x128x1xf32>
    %83 = vector.broadcast %82 : vector<4x128x1xf32> to vector<4x128x128xf32>
    %84 = arith.mulf %79, %83 : vector<4x128x128xf32>
    %85 = arith.truncf %67 : vector<4x8x128xf32> to vector<4x8x128xbf16>
    %86 = arith.truncf %84 : vector<4x128x128xf32> to vector<4x128x128xbf16>
    "tpu.trace_start"() <{level = 10 : i32, message = "hdm,hnm->hdn"}> : () -> ()
    %cst_33 = arith.constant dense<0.000000e+00> : vector<4x8x128xf32>
    %87 = tpu.matmul %85, %86, %cst_33 {dimension_numbers = #tpu.dot_dimension_numbers<[2], [2], [1], [1], [0, 0, 0, 1, 1, 1], [0], [0]>} : vector<4x8x128xbf16>, vector<4x128x128xbf16>, vector<4x8x128xf32> -> vector<4x8x128xf32>
    "tpu.trace_stop"() : () -> ()
    %88 = vector.shape_cast %87 : vector<4x8x128xf32> to vector<32x128xf32>
    %c192 = arith.constant 192 : index
    %c0_34 = arith.constant 0 : index
    %89 = vector.load %arg4[%c192, %c0_34] : memref<224x32xbf16, #tpu.memory_space<vmem>>, vector<32x32xbf16>
    %90 = arith.truncf %88 : vector<32x128xf32> to vector<32x128xbf16>
    %cst_35 = arith.constant dense<0.000000e+00> : vector<32x128xf32>
    %91 = tpu.matmul %89, %90, %cst_35 {dimension_numbers = #tpu.dot_dimension_numbers<[1], [0], [0], [1], [0, 0, 1, 1], [], []>} : vector<32x32xbf16>, vector<32x128xbf16>, vector<32x128xf32> -> vector<32x128xf32>
    %92 = vector.broadcast %10 : vector<32x1xf32> to vector<32x128xf32>
    %93 = arith.addf %91, %92 : vector<32x128xf32>
    %c0_36 = arith.constant 0 : index
    %c0_37 = arith.constant 0 : index
    %c0_38 = arith.constant 0 : index
    %94 = vector.load %arg6[%c0_36, %c0_37, %c0_38] : memref<1x32x128xf32, #tpu.memory_space<vmem>>, vector<1x32x128xf32>
    %95 = vector.shape_cast %94 : vector<1x32x128xf32> to vector<32x128xf32>
    %96 = vector.shape_cast %93 : vector<32x128xf32> to vector<1x32x128xf32>
    tpu.vector_store %arg6[%c0_36, %c0_37, %c0_38], %96 {strides = array<i32>} : memref<1x32x128xf32, #tpu.memory_space<vmem>>, vector<1x32x128xf32>,
    return
  }
  func.func @transform_0(%arg0: i32) -> (i32, i32, i32) {
    %c0_i32 = arith.constant 0 : i32
    %c0_i32_0 = arith.constant 0 : i32
    %c0_i32_1 = arith.constant 0 : i32
    return %arg0, %c0_i32, %c0_i32_0 : i32, i32, i32
  }
  func.func @transform_1(%arg0: i32) -> (i32, i32, i32) {
    %c0_i32 = arith.constant 0 : i32
    %c0_i32_0 = arith.constant 0 : i32
    %c0_i32_1 = arith.constant 0 : i32
    return %arg0, %c0_i32, %c0_i32_0 : i32, i32, i32
  }
  func.func @transform_2(%arg0: i32) -> (i32, i32) {
    %c0_i32 = arith.constant 0 : i32
    %c0_i32_0 = arith.constant 0 : i32
    %c0_i32_1 = arith.constant 0 : i32
    return %c0_i32, %c0_i32_0 : i32, i32
  }
  func.func @transform_3(%arg0: i32) -> (i32, i32) {
    %c0_i32 = arith.constant 0 : i32
    %c0_i32_0 = arith.constant 0 : i32
    %c0_i32_1 = arith.constant 0 : i32
    return %c0_i32, %c0_i32_0 : i32, i32
  }
  func.func @transform_4(%arg0: i32) -> (i32, i32) {
    %c0_i32 = arith.constant 0 : i32
    %c0_i32_0 = arith.constant 0 : i32
    %c0_i32_1 = arith.constant 0 : i32
    return %c0_i32, %c0_i32_0 : i32, i32
  }
  func.func @transform_5(%arg0: i32) -> (i32, i32, i32) {
    %c0_i32 = arith.constant 0 : i32
    %c0_i32_0 = arith.constant 0 : i32
    %c0_i32_1 = arith.constant 0 : i32
    return %arg0, %c0_i32, %c0_i32_0 : i32, i32, i32
  }
}

</mosaic_0001>

<bundles_post_ra>
// kernel: tpu_custom_call.1
= control target key start
LH: loop header
LB: loop body
LE: loop exit
PB: predicated region body
PF: predicated region fallthrough
CT: control target
= control target key end

     0   :  { %10 = vsyncpa [#allocation3], 0  ;;  %s4632_s0 = inlined_call_operand.vmem [shape: f32[2,32,128], index: 0, kind: input, shape index: {}]   ;;  %s4633_s1 = inlined_call_operand.hbm [shape: f32[2,32,128], index: 1, kind: input, shape index: {}]   ;;  %s4634_s2 = inlined_call_operand.vmem [shape: f32[128,128], index: 2, kind: input, shape index: {}]   ;;  %s4635_s3 = inlined_call_operand.vmem [shape: bf16[224,32], index: 3, kind: input, shape index: {}]   ;;  %s4636_s4 = inlined_call_operand.vmem [shape: f32[96,4], index: 4, kind: input, shape index: {}]   ;;  %s4637_s5 = inlined_call_operand.hbm [shape: f32[2,32,128], index: 5, kind: output, shape index: {}]  }
   0x1   :  { %12 = vsyncpa [#allocation3 + $0x1], 0 }
   0x2   :  { %13 = vsyncpa [#allocation4], 0 }
   0x3   :  { %15 = vsyncpa [#allocation4 + $0x1], 0  ;;  %s3255_s18 = smov 0   ;;  %s3257_s19 = smov 0  }
   0x4   :  { %s3259_s20 = smov 0   ;;  %s3261_s21 = smov 0  }
   0x5 LB: > { %s3276_s22 = sadd.s32 4294967295, %s3214_s21   ;;  %s2474_s23 = sadd.s32 4294967294, %s3214_s21   ;;  %s3214_s21 = sphi %s3261_s21, %s4849_s21   ;;  %s3210_s20 = sphi %s3259_s20, %s4848_s20   ;;  %s3206_s19 = sphi %s3257_s19, %s4847_s19   ;;  %s3202_s18 = sphi %s3255_s18, %s4846_s18  }
   0x6   : > { %s3280_s24 = sadd.s32 1, %s3214_s21   ;;  %s54_s25 = sadd.s32 1, %s3210_s20 }
   0x7   : > { %s51_s26 = ssub.s32 %s3214_s21, %s3280_s24  ;;  %p61_p0 = scmp.ne.s32.totalorder %s3210_s20, %s3206_s19 }
   0x8   : > { %p52_p1 = scmp.eq.s32.totalorder %s51_s26, 0  ;;  %p62_p2 = scmp.eq.s32.totalorder %s3214_s21, 0 }
   0x9   : > { %p67_p3 = scmp.ne.s32.totalorder %s3206_s19, %s3202_s18  ;;  %p68_p4 = scmp.eq.s32.totalorder %s3276_s22, 0 }
   0xa   : > { %s3292_s27 = scalar_select %p52_p1, %s3210_s20, %s54_s25  }
   0xb   : > { %p3294_p5 = por %p62_p2, %p61_p0  ;;  %p3298_p6 = por %p68_p4, %p67_p3 }
   0xc   : > { %p154_p7 = scmp.eq.s32.totalorder %s3276_s22, 1  ;;  %p160_p8 = scmp.eq.s32.totalorder %s2474_s23, 1 }
   0xd   : > { %p2623_p10 = scmp.lt.s32.totalorder %s3214_s21, 2  ;;  %s197_s7 = sand.u32 1, %s3210_s20  }
   0xe   : > { %p3305_p11 = por %p154_p7, %p61_p0  ;;  %p3309_p12 = por %p160_p8, %p67_p3 }
   0xf   : > { %s2592_s8 = sshll.u32 %s3214_s21, 5  ;;  %s2477_s9 = sshll.u32 %s197_s7, 5 }
  0x10   : > { %s206_s12 = scalar_lea.hbm %s4633_s1, %s2592_s8  ;;  %s201_s14 = scalar_lea.vmem [#allocation2], %s2477_s9 }
  0x11   : > { %s207_s13 = sshll.u32 %s206_s12, 4  ;;  %s209_s15 = sshll.u32 %s201_s14, 4  ;;  %s208_s13 = int_to_ptr.hbm [resolvable:$true] %s207_s13  ;;  %s210_s15 = int_to_ptr.vmem [resolvable:$true] %s209_s15 }
  0x12   : > { %p3320_p13 = pnand %p2623_p10, %p3294_p5  ;;  %p2480_p0 = scmp.ge.s32.totalorder %s3214_s21, 1 }
  0x13   : > { %p217_p1 = scmp.lt.s32.totalorder %s3214_s21, 3  ;;  %s198_s17 = scalar_lea.sflag [#allocation3], %s197_s7 }
  0x14   : > { %s3118_s23 = sshra.s32 %s208_s13, 4  ;;  %p3122_p3 = pneg %p3320_p13  ;;  %s3119_s23 = int_to_ptr.hbm [resolvable:$true] %s3118_s23 }
  0x15   : > { %s3120_s25 = scalar_lea.hbm %s3119_s23, 32  ;;  %s3125_s28 = scalar_lea.hbm %s4633_s1, 64 }
  0x16   : > { %p3121_p2 = scmp.ne.s32.totalorder %s3119_s23, %s3120_s25  ;;  %p3126_p5 = scmp.lt.s32.totalorder %s3119_s23, %s4633_s1 }
  0x17   : > { %p3127_p8 = scmp.lt.s32.totalorder %s3125_s28, %s3120_s25 }
  0x18   : > { %p3123_p4 = pnand %p3122_p3, %p3121_p2 }
  0x19   : > { %p3128_p10 = por %p3127_p8, %p3126_p5 }
  0x1a   : > { %p3124_p7 = pneg %p3123_p4 }
  0x1c   : > { %p3129_p9 = pnand %p3128_p10, %p3124_p7 }
  0x1e   : > { %3132 = shalt.err (!%p3129_p9)
}
  0x1f   : > { %s3216_s7 = smov 128   ;;  %s3217_s11 = smov 8  }
  0x20   : > { %2618 = dma.hbm_to_vmem [thread:$0]  (!%p3320_p13), %s208_s13, 512, %s210_s15, %s198_s17, %s3216_s7, %s3216_s7, %s3217_s11  }
  0x21   : > { %p218_p2 = pnand %p2480_p0, %p217_p1 }
  0x23   : > { %221 = sbr.rel (%p218_p2) target bundleno = 1636 (0x664), region = 40 }
  0x28   : > { %s3341_s12 = sand.u32 1, %s3206_s19  }
  0x29   : > { %s2481_s14 = sshll.u32 %s3341_s12, 5  ;;  %s224_s23 = scalar_lea.sflag [#allocation3], %s3341_s12 }
  0x2a   : > { %s3347_s25 = scalar_lea.vmem [#allocation2], %s2481_s14 }
  0x2b   : > { %3193 = dma.done.wait (%p3298_p6), %s224_s23, 512  }
  0x2c   : > { %3195 = vsyncadd (%p3298_p6), %s224_s23, 4294966784  ;;  %v3218_v0 = vmov 2   ;;  %v3359_v1 = vld [vmem:[%s4636_s4 + $0x30] sm:$0xff]  ;;  %v3371_v3 = vld [vmem:[%s4636_s4] sm:$0xff]  ;;  %p260_p6 = scmp.lt.s32.totalorder %s3276_s22, 1  ;;  %v3219_v7 = vmov 32.0  }
  0x2d   : > { %2668 = vset.pattern.permute.xlu1 %v3218_v0  ;;  %2667 = vset.pattern.permute.xlu0 %v3218_v0  ;;  %v3364_v2 = vld [vmem:[%s4636_s4 + $0x10] sm:$0xff]  ;;  %v3378_v4 = vld [vmem:[%s4636_s4 + $0x38] sm:$0xff]  ;;  %v3389_v6 = vld [vmem:[%s4636_s4 + $0x8] sm:$0xff]  ;;  %2849 = vrcp.f32 %v3219_v7  ;;  %v4638_v23 = vmov 3   ;;  %vm561_vm7 = vcmask 261120   ;;  %vm1023_vm8 = vcmask 1043456  }
  0x2e   : > { %2669 = vset.pattern.permute.xlu2 %v3218_v0  ;;  %372 = vperm.xlu1 %2668, %v3359_v1   ;;  %v3383_v5 = vld [vmem:[%s4636_s4 + $0x18] sm:$0xff]  ;;  %s261_s7 = scalar_select %p260_p6, %s3276_s22, 1  ;;  %v3397_v8 = vld [vmem:[%s4636_s4 + $0x28] sm:$0xff]  ;;  %v3402_v9 = vld [vmem:[%s4636_s4 + $0x20] sm:$0xff]  ;;  %vm998_vm9 = vcmask 64512  }
  0x2f   : > { %348 = vperm.xlu0 %2667, %v3364_v2   ;;  %338 = vperm.xlu2 %2669, %v3371_v3   ;;  %v284_v10 = vld [vmem:[%s4636_s4 + $0x50] sm:$0xff]  ;;  %v285_v20 = vld [vmem:[%s4636_s4 + $0x58] sm:$0xff]  ;;  %v270_v25 = vld [vmem:[%s3347_s25] sm:$0xff]  ;;  %s2608_s8 = sshll.u32 %s3276_s22, 5  ;;  %s2374_s22 = scalar_lea.sflag [#allocation4], %s3341_s12 }
  0x30   : > { %s2593_s13 = sshll.u32 %s261_s7, 5  ;;  %v271_v26 = vld [vmem:[%s3347_s25 + $0x8] sm:$0xff]  ;;  %v272_v29 = vld [vmem:[%s3347_s25 + $0x10] sm:$0xff]  ;;  %v273_v33 = vld [vmem:[%s3347_s25 + $0x18] sm:$0xff]  ;;  %s2385_s7 = scalar_lea.hbm %s4637_s5, %s2608_s8 }
  0x31   : > { %s264_s28 = scalar_lea.vmem %s4632_s0, %s2593_s13  ;;  %v386_v28 = vadd.f32 %v271_v26, %v270_v25  ;;  %v3426_v34 = vld [vmem:[%s4636_s4 + $0x40] sm:$0xff]  ;;  %v283_v37 = vld [vmem:[%s4636_s4 + $0x48] sm:$0xff]  ;;  %s2388_s23 = sshll.u32 %s2385_s7, 4  ;;  %s2389_s23 = int_to_ptr.hbm [resolvable:$true] %s2388_s23 }
  0x32   : > { %v266_v12 = vld [vmem:[%s264_s28] sm:$0xff]  ;;  %v267_v13 = vld [vmem:[%s264_s28 + $0x8] sm:$0xff]  ;;  %v268_v16 = vld [vmem:[%s264_s28 + $0x10] sm:$0xff]  ;;  %s3168_s25 = scalar_lea.hbm %s4637_s5, 64 }
  0x33   : > { %v2850_v11 = vpop.eup %2849  ;;  %v286_v15 = vadd.f32 %v267_v13, %v266_v12  ;;  %v269_v19 = vld [vmem:[%s264_s28 + $0x18] sm:$0xff]  ;;  %v387_v31 = vadd.f32 %v386_v28, %v272_v29  ;;  %s259_s28 = scalar_lea.vmem [#allocation5], %s2481_s14  ;;  %s3162_s14 = sshra.s32 %s2389_s23, 4  ;;  %s3163_s14 = int_to_ptr.hbm [resolvable:$true] %s3162_s14 }
  0x34   : > { %v296_v14 = vmul.f32 32.0, %v2850_v11  ;;  %vm300_vm0 = vweird.f32 %v2850_v11  ;;  %s2386_s11 = sshll.u32 %s259_s28, 4  ;;  %s3164_s13 = scalar_lea.hbm %s3163_s14, 32  ;;  %s2387_s11 = int_to_ptr.vmem [resolvable:$true] %s2386_s11 }
  0x35   : > { %v287_v17 = vadd.f32 %v286_v15, %v268_v16  ;;  %v388_v36 = vadd.f32 %v387_v31, %v273_v33  ;;  %p3165_p9 = scmp.ne.s32.totalorder %s3163_s14, %s3164_s13  ;;  %p3169_p1 = scmp.lt.s32.totalorder %s3163_s14, %s4637_s5 }
  0x36   : > { %377 = vperm.xlu1 %2668, %v3378_v4   ;;  %v297_v18 = vsub.f32 1.0, %v296_v14  ;;  %p3170_p3 = scmp.lt.s32.totalorder %s3168_s25, %s3164_s13 }
  0x37   : > { %353 = vperm.xlu0 %2667, %v3383_v5   ;;  %343 = vperm.xlu2 %2669, %v3389_v6   ;;  %v288_v21 = vadd.f32 %v287_v17, %v269_v19  ;;  %v389_v39 = vrot.slane %v388_v36, 4  ;;  %p3166_p13 = pnand %p3165_p9, %p3305_p11 }
  0x38   : > { %v298_v24 = vmul.f32 %v2850_v11, %v297_v18  ;;  %p3171_p4 = por %p3170_p3, %p3169_p1 }
  0x39   : > { %v289_v22 = vrot.slane %v288_v21, 4  ;;  %v390_v42 = vadd.f32 %v389_v39, %v388_v36  ;;  %p3167_p0 = pneg %p3166_p13 }
  0x3a   : > { %v299_v32 = vadd.f32 %v2850_v11, %v298_v24 }
  0x3b   : > { %v290_v27 = vadd.f32 %v289_v22, %v288_v21  ;;  %v391_v44 = vrot.slane %v390_v42, 2  ;;  %p3172_p7 = pnand %p3171_p4, %p3167_p0 }
  0x3c   : > { %v301_v40 = vsel %vm300_vm0, %v2850_v11, %v299_v32 }
  0x3d   : > { %v291_v30 = vrot.slane %v290_v27, 2  ;;  %v392_v47 = vadd.f32 %v391_v44, %v390_v42 }
  0x3e   : > { %367 = vperm.xlu1 %2668, %v3397_v8  }
  0x3f   : > { %362 = vperm.xlu0 %2667, %v3402_v9   ;;  %441 = vperm.xlu2 %2669, %v284_v10   ;;  %v292_v35 = vadd.f32 %v291_v30, %v290_v27  ;;  %v393_v51 = vrot.slane %v392_v47, 1 }
  0x41   : > { %v293_v38 = vrot.slane %v292_v35, 1  ;;  %v394_v55 = vadd.f32 %v393_v51, %v392_v47 }
  0x43   : > { %v294_v41 = vadd.f32 %v293_v38, %v292_v35  ;;  %v395_v58 = vmul.f32 %v394_v55, %v301_v40 }
  0x45   : > { %v302_v43 = vmul.f32 %v301_v40, %v294_v41  ;;  %v3444_v60 = vsub.f32 %v270_v25, %v395_v58  ;;  %v3446_v61 = vsub.f32 %v271_v26, %v395_v58  ;;  %v3448_v63 = vsub.f32 %v272_v29, %v395_v58 }
  0x46   : > { %2670 = vset.pattern.permute.xlu1 %v4638_v23  ;;  %v3454_v11 = vsub.f32 %v273_v33, %v395_v58 }
  0x47   : > { %446 = vperm.xlu0 %2667, %v285_v20   ;;  %462 = vperm.xlu1 %2670, %v3364_v2   ;;  %v3434_v45 = vsub.f32 %v266_v12, %v302_v43  ;;  %v3436_v46 = vsub.f32 %v267_v13, %v302_v43  ;;  %v305_v48 = vsub.f32 %v268_v16, %v302_v43 }
  0x48   : > { %2671 = vset.pattern.permute.xlu2 %v4638_v23  ;;  %v306_v52 = vsub.f32 %v269_v19, %v302_v43  ;;  %v401_v7 = vmul.f32 %v3446_v61, %v3446_v61  ;;  %v402_v12 = vmul.f32 %v3448_v63, %v3448_v63  ;;  %v403_v15 = vmul.f32 %v3454_v11, %v3454_v11 }
  0x49   : > { %466 = vperm.xlu2 %2671, %v3383_v5   ;;  %v307_v49 = vmul.f32 %v3434_v45, %v3434_v45  ;;  %v308_v50 = vmul.f32 %v3436_v46, %v3436_v46  ;;  %v309_v53 = vmul.f32 %v305_v48, %v305_v48 }
  0x4a   : > { %v310_v56 = vmul.f32 %v306_v52, %v306_v52 }
  0x4b   : > { %v311_v54 = vadd.f32 %v308_v50, %v307_v49 }
  0x4d   : > { %v312_v57 = vadd.f32 %v311_v54, %v309_v53 }
  0x4f   : > { %431 = vperm.xlu0 %2667, %v3426_v34   ;;  %2672 = vset.pattern.permute.xlu1 %v3218_v0  ;;  %v313_v59 = vadd.f32 %v312_v57, %v310_v56  ;;  %v400_v0 = vmul.f32 %v3444_v60, %v3444_v60 }
  0x50   : > { %436 = vperm.xlu1 %2672, %v283_v37  }
  0x51   : > { %454 = vperm.xlu2 %2671, %v3371_v3   ;;  %v314_v62 = vrot.slane %v313_v59, 4  ;;  %v404_v13 = vadd.f32 %v401_v7, %v400_v0 }
  0x53   : > { %v315_v10 = vadd.f32 %v314_v62, %v313_v59  ;;  %v405_v16 = vadd.f32 %v404_v13, %v402_v12 }
  0x55   : > { %v316_v14 = vrot.slane %v315_v10, 2  ;;  %v406_v18 = vadd.f32 %v405_v16, %v403_v15 }
  0x57   : > { %2673 = vset.pattern.permute.xlu0 %v4638_v23  ;;  %v317_v17 = vadd.f32 %v316_v14, %v315_v10  ;;  %v407_v20 = vrot.slane %v406_v18, 4 }
  0x58   : > { %458 = vperm.xlu0 %2673, %v3389_v6  }
  0x59   : > { %v318_v19 = vrot.slane %v317_v17, 1  ;;  %v408_v22 = vadd.f32 %v407_v20, %v406_v18  ;;  %v2594_v20 = vld [vmem:[%s4635_s3] sm:$0xff] }
  0x5b   : > { %v319_v21 = vadd.f32 %v318_v19, %v317_v17  ;;  %v409_v25 = vrot.slane %v408_v22, 2  ;;  %v3221_v19 = vmov 1  }
  0x5c   : > { %2674 = vset.pattern.permute.xlu1 %v3221_v19  ;;  %2675 = vset.pattern.permute.xlu2 %v3221_v19 }
  0x5d   : > { %v320_v24 = vmul.f32 %v319_v21, %v301_v40  ;;  %v410_v27 = vadd.f32 %v409_v25, %v408_v22  ;;  %628 = vperm.xlu1 %2674, %v3371_v3   ;;  %632 = vperm.xlu2 %2675, %v3389_v6  }
  0x5f   : > { %v321_v26 = vadd.f32 1e-05, %v320_v24  ;;  %v411_v28 = vrot.slane %v410_v27, 1 }
  0x60   : > { %2678 = vset.pattern.permute.xlu0 %v3221_v19 }
  0x61   : > { %2851 = vrsqrt.f32 %v321_v26  ;;  %v412_v29 = vadd.f32 %v411_v28, %v410_v27  ;;  %vm328_vm1 = vweird.f32 %v321_v26  ;;  %636 = vperm.xlu0 %2678, %v3364_v2  }
  0x63   : > { %v413_v32 = vmul.f32 %v412_v29, %v301_v40 }
  0x65   : > { %v414_v35 = vadd.f32 1e-05, %v413_v32 }
  0x67   : > { %v2852_v30 = vpop.eup %2851  ;;  %2853 = vrsqrt.f32 %v414_v35  ;;  %vm421_vm4 = vweird.f32 %v414_v35 }
  0x68   : > { %v323_v31 = vmul.f32 %v2852_v30, %v321_v26  ;;  %vm329_vm2 = vweird.f32 %v2852_v30 }
  0x69   : > { %vm330_vm3 = vmor %vm328_vm1, %vm329_vm2 }
  0x6a   : > { %v324_v33 = vmul.f32 %v2852_v30, %v323_v31  ;;  %v2595_v31 = vld [vmem:[%s4635_s3 + $0x8] sm:$0xff] }
  0x6c   : > { %v325_v36 = vmul.f32 0.5, %v324_v33 }
  0x6d   : > { %v2854_v38 = vpop.eup %2853 }
  0x6e   : > { %v326_v37 = vsub.f32 1.5, %v325_v36  ;;  %v416_v42 = vmul.f32 %v2854_v38, %v414_v35  ;;  %vm422_vm5 = vweird.f32 %v2854_v38 }
  0x6f   : > { %vm423_vm6 = vmor %vm421_vm4, %vm422_vm5 }
  0x70   : > { %v327_v41 = vmul.f32 %v2852_v30, %v326_v37  ;;  %v417_v49 = vmul.f32 %v2854_v38, %v416_v42  ;;  %v2598_v42 = vld [vmem:[%s4635_s3 + $0x20] sm:$0xff] }
  0x72   : > { %v331_v43 = vsel %vm330_vm3, %v2852_v30, %v327_v41  ;;  %v418_v40 = vmul.f32 0.5, %v417_v49 }
  0x73   : > { %v334_v50 = vmul.f32 %v331_v43, %v305_v48  ;;  %v335_v53 = vmul.f32 %v331_v43, %v306_v52  ;;  %v332_v59 = vmul.f32 %v331_v43, %v3434_v45  ;;  %v333_v62 = vmul.f32 %v331_v43, %v3436_v46 }
  0x74   : > { %v419_v58 = vsub.f32 1.5, %v418_v40 }
  0x76   : > { %v420_v10 = vmul.f32 %v2854_v38, %v419_v58  ;;  %v2603_v58 = vld [vmem:[%s4635_s3 + $0x48] sm:$0xff] }
  0x78   : > { %v424_v16 = vsel %vm423_vm6, %v2854_v38, %v420_v10 }
  0x79   : > { %v427_v46 = vmul.f32 %v424_v16, %v3448_v63  ;;  %v428_v21 = vmul.f32 %v424_v16, %v3454_v11  ;;  %v425_v29 = vmul.f32 %v424_v16, %v3444_v60  ;;  %v426_v30 = vmul.f32 %v424_v16, %v3446_v61 }
  0x7a   : > { %v3222_v11 = vmov 0  }
  0x7b   : > { %2676 = vset.pattern.permute.xlu1 %v3222_v11  ;;  %2677 = vset.pattern.permute.xlu2 %v3222_v11 }
  0x7c   : > { %500 = vperm.xlu1 %2676, %v3402_v9   ;;  %504 = vperm.xlu2 %2677, %v3397_v8   ;;  %v2600_v8 = vld [vmem:[%s4635_s3 + $0x30] sm:$0xff] }
  0x7d   : > { %v2596_v9 = vld [vmem:[%s4635_s3 + $0x10] sm:$0xff] }
  0x84   : > { %2679 = vset.pattern.permute.xlu1 %v3221_v19  ;;  %508 = vperm.xlu2 %2677, %v3359_v1   ;;  %v2601_v1 = vld [vmem:[%s4635_s3 + $0x38] sm:$0xff] }
  0x85   : > { %640 = vperm.xlu1 %2679, %v3383_v5   ;;  %v2597_v5 = vld [vmem:[%s4635_s3 + $0x18] sm:$0xff] }
  0x89   : > { %v339_v39 = vpop.permute.xlu2 %338 }
  0x8a   : > { %v356_v48 = vmul.f32 %v339_v39, %v332_v59 }
  0x8d   : > { %2680 = vset.pattern.permute.xlu1 %v3222_v11 }
  0x8e   : > { %512 = vperm.xlu1 %2680, %v3378_v4  }
  0x91   : > { %v344_v51 = vpop.permute.xlu2 %343 }
  0x92   : > { %v357_v13 = vmul.f32 %v344_v51, %v333_v62 }
  0x96   : > { %516 = vperm.xlu1 %2680, %v3426_v34   ;;  %v2602_v34 = vld [vmem:[%s4635_s3 + $0x40] sm:$0xff] }
  0x99   : > { %v442_v52 = vpop.permute.xlu2 %441 }
  0x9a   : > { %v451_v22 = vmul.f32 %v442_v52, %v427_v46 }
  0xa0   : > { %v373_v44 = vpop.permute.xlu1 %372 }
  0xa1   : > { %v349_v47 = vpop.permute.xlu0 %348 }
  0xa2   : > { %v358_v54 = vmul.f32 %v349_v47, %v334_v50 }
  0xa3   : > { %v467_v25 = vpop.permute.xlu2 %466 }
  0xa4   : > { %v382_v0 = vadd.f32 %v373_v44, %v358_v54 }
  0xa8   : > { %v378_v55 = vpop.permute.xlu1 %377 }
  0xa9   : > { %v354_v56 = vpop.permute.xlu0 %353 }
  0xaa   : > { %v359_v57 = vmul.f32 %v354_v56, %v335_v53 }
  0xab   : > { %v455_v35 = vpop.permute.xlu2 %454 }
  0xac   : > { %v383_v7 = vadd.f32 %v378_v55, %v359_v57 }
  0xae   : > { %v385_v12 = vpack.c.bf16 %v383_v7, %v382_v0 }
  0xb0   : > { %586 = vmatpush.bf16.msra.mxu0 %v385_v12  ;;  %v368_v14 = vpop.permute.xlu1 %367 }
  0xb1   : > { %v363_v15 = vpop.permute.xlu0 %362  ;;  %v381_v17 = vadd.f32 %v368_v14, %v357_v13 }
  0xb2   : > { %v380_v18 = vadd.f32 %v363_v15, %v356_v48 }
  0xb4   : > { %v384_v45 = vpack.c.bf16 %v381_v17, %v380_v18 }
  0xb6   : > { %587 = vmatpush.bf16.msra.mxu0 %v384_v45 }
  0xb7   : > { %v633_v47 = vpop.permute.xlu2 %632 }
  0xb9   : > { %v447_v24 = vpop.permute.xlu0 %446  ;;  %2509 = vmatmul.msk.bf16.vlgmr.msra.gmra.mxu0 %vm561_vm7, %v2594_v20  ;;  %v463_v2 = vpop.permute.xlu1 %462 }
  0xba   : > { %v452_v3 = vmul.f32 %v447_v24, %v428_v21  ;;  %v471_v26 = vadd.f32 %v463_v2, %v451_v22 }
  0xbc   : > { %v472_v63 = vadd.f32 %v467_v25, %v452_v3 }
  0xbe   : > { %v474_v27 = vpack.c.bf16 %v472_v63, %v471_v26  ;;  %v2604_v63 = vld [vmem:[%s4635_s3 + $0x50] sm:$0xff] }
  0xc0   : > { %721 = vmatpush.bf16.msra.mxu1 %v474_v27 }
  0xc1   : > { %v432_v28 = vpop.permute.xlu0 %431 }
  0xc2   : > { %v437_v6 = vpop.permute.xlu1 %436  ;;  %v449_v32 = vmul.f32 %v432_v28, %v425_v29  ;;  %v2599_v28 = vld [vmem:[%s4635_s3 + $0x28] sm:$0xff]  ;;  %v2605_v29 = vld [vmem:[%s4635_s3 + $0x58] sm:$0xff] }
  0xc3   : > { %v450_v33 = vmul.f32 %v437_v6, %v426_v30 }
  0xc4   : > { %v469_v61 = vadd.f32 %v455_v35, %v449_v32 }
  0xc9   : > { %2510 = vmatmul.msk.bf16.gmra.mxu0 %vm561_vm7, %v2595_v31 }
  0xca   : > { %v459_v60 = vpop.permute.xlu0 %458 }
  0xcb   : > { %v470_v36 = vadd.f32 %v459_v60, %v450_v33 }
  0xcd   : > { %v473_v37 = vpack.c.bf16 %v470_v36, %v469_v61 }
  0xcf   : > { %722 = vmatpush.bf16.msra.mxu1 %v473_v37  ;;  %v629_v4 = vpop.permute.xlu1 %628 }
  0xd2   : > { %2539 = vmatmul.msk.bf16.vlgmr.msra.gmra.mxu1 %vm561_vm7, %v2600_v8 }
  0xd3   : > { %v637_v13 = vpop.permute.xlu0 %636 }
  0xd6   : > { %v505_v57 = vpop.permute.xlu2 %504 }
  0xd9   : > { %2511 = vmatmul.msk.bf16.gmra.mxu0 %vm561_vm7, %v2596_v9 }
  0xde   : > { %v509_v48 = vpop.permute.xlu2 %508 }
  0xe2   : > { %2540 = vmatmul.msk.bf16.gmra.mxu1 %vm561_vm7, %v2601_v1 }
  0xe9   : > { %2512 = vmatmul.msk.bf16.gmra.mxu0 %vm561_vm7, %v2597_v5 }
  0xee   : > { %v501_v49 = vpop.permute.xlu1 %500 }
  0xf2   : > { %2541 = vmatmul.msk.bf16.gmra.mxu1 %vm561_vm7, %v2602_v34 }
  0xf7   : > { %v641_v52 = vpop.permute.xlu1 %640 }
  0xf9   : > { %2513 = vmatmul.msk.bf16.gmra.mxu0 %vm561_vm7, %v2598_v42 }
 0x100   : > { %v513_v22 = vpop.permute.xlu1 %512 }
 0x102   : > { %2542 = vmatmul.msk.bf16.gmra.mxu1 %vm561_vm7, %v2603_v58 }
 0x109   : > { %2514 = vmatmul.msk.bf16.gmra.mxu0 %vm561_vm7, %v2599_v28 }
 0x112   : > { %2543 = vmatmul.msk.bf16.gmra.mxu1 %vm561_vm7, %v2604_v63 }
 0x122   : > { %2544 = vmatmul.msk.bf16.gmra.mxu1 %vm561_vm7, %v2605_v29 }
 0x136   : > { %v589_v38 = vpop.f32.mrf.mxu0 }
 0x13e   : > { %v590_v39 = vpop.f32.mrf.mxu0 }
 0x146   : > { %v592_v41 = vpop.f32.mrf.mxu0 }
 0x14e   : > { %v593_v43 = vpop.f32.mrf.mxu0 }
 0x14f   : > { %v724_v44 = vpop.f32.mrf.mxu1 }
 0x150   : > { %v725_v40 = vadd.f32 %v724_v44, %v629_v4 }
 0x156   : > { %v595_v50 = vpop.f32.mrf.mxu0 }
 0x157   : > { %v726_v51 = vpop.f32.mrf.mxu1  ;;  %v596_v53 = vadd.f32 %v595_v50, %v501_v49 }
 0x158   : > { %v727_v54 = vadd.f32 %v726_v51, %v633_v47 }
 0x159   : > { %v938_v55 = vpack.c.bf16 %v596_v53, %v596_v53 }
 0x15a   : > { %v2681_v56 = vpack.i.bf16 %v727_v54, %v725_v40 }
 0x15b   : > { %v1025_v59 = vsel %vm1023_vm8, %v938_v55, 0 }
 0x15c   : > { %2682 = vxpose.xlu2.b32.start.end [1/1] (short) %v2681_v56, 128  ;;  %1034 = vmatpush.bf16.msra.mxu2 %v1025_v59 }
 0x15e   : > { %v597_v62 = vpop.f32.mrf.mxu0 }
 0x15f   : > { %v729_v0 = vpop.f32.mrf.mxu1  ;;  %v598_v7 = vadd.f32 %v597_v62, %v505_v57 }
 0x160   : > { %v730_v17 = vadd.f32 %v729_v0, %v637_v13 }
 0x161   : > { %v939_v10 = vpack.c.bf16 %v598_v7, %v598_v7 }
 0x163   : > { %v1141_v12 = vsel %vm1023_vm8, %v939_v10, 0 }
 0x164   : > { %1150 = vmatpush.bf16.msra.mxu3 %v1141_v12 }
 0x166   : > { %v600_v14 = vpop.f32.mrf.mxu0 }
 0x167   : > { %v731_v15 = vpop.f32.mrf.mxu1  ;;  %v601_v16 = vadd.f32 %v600_v14, %v509_v48 }
 0x168   : > { %v732_v18 = vadd.f32 %v731_v15, %v641_v52 }
 0x169   : > { %v940_v19 = vpack.c.bf16 %v601_v16, %v601_v16 }
 0x16a   : > { %v2763_v45 = vpack.i.bf16 %v732_v18, %v730_v17 }
 0x16b   : > { %v1257_v46 = vsel %vm1023_vm8, %v940_v19, 0 }
 0x16c   : > { %2764 = vxpose.xlu0.b32.start.end [1/1] (short) %v2763_v45, 128  ;;  %1266 = vmatpush.bf16.msrb.mxu0 %v1257_v46 }
 0x16e   : > { %v602_v24 = vpop.f32.mrf.mxu0 }
 0x16f   : > { %v734_v20 = vpop.f32.mrf.mxu1  ;;  %v603_v25 = vadd.f32 %v602_v24, %v513_v22 }
 0x171   : > { %v941_v3 = vpack.c.bf16 %v603_v25, %v603_v25 }
 0x173   : > { %v1373_v2 = vsel %vm1023_vm8, %v941_v3, 0 }
 0x174   : > { %1382 = vmatpush.bf16.msrb.mxu1 %v1373_v2 }
 0x177   : > { %v735_v21 = vpop.f32.mrf.mxu1 }
 0x17f   : > { %v737_v26 = vpop.f32.mrf.mxu1 }
 0x187   : > { %v738_v27 = vpop.f32.mrf.mxu1 }
 0x1d3   : > { %2845 = vset.pattern.permute.xlu0 %v3222_v11 }
 0x1f5   : > { %v2683_v30 = vpop.trf.xlu2 }
 0x1f6   : > { %v2684_v11 = vunpack.i.l.bf16 %v2683_v30  ;;  %v2687_v6 = vunpack.i.h.bf16 %v2683_v30 }
 0x1f8   : > { %v874_v31 = vpack.c.bf16 %v2684_v11, %v2684_v11  ;;  %v890_v32 = vpack.c.bf16 %v2687_v6, %v2687_v6 }
 0x1fa   : > { %v974_v36 = vunpack.c.l.b16 %v874_v31  ;;  %v1092_v8 = vunpack.c.l.b16 %v890_v32 }
 0x1fd   : > { %v2688_v33 = vpop.trf.xlu2 }
 0x1fe   : > { %v2689_v35 = vunpack.i.l.bf16 %v2688_v33  ;;  %v2692_v60 = vunpack.i.h.bf16 %v2688_v33 }
 0x200   : > { %v875_v61 = vpack.c.bf16 %v2689_v35, %v2689_v35  ;;  %v891_v37 = vpack.c.bf16 %v2692_v60, %v2692_v60 }
 0x202   : > { %v975_v9 = vunpack.c.l.b16 %v875_v61  ;;  %v1093_v1 = vunpack.c.l.b16 %v891_v37 }
 0x204   : > { %v990_v5 = vpack.c.b16 %v975_v9, %v974_v36  ;;  %v1108_v38 = vpack.c.b16 %v1093_v1, %v1092_v8 }
 0x205   : > { %v2693_v39 = vpop.trf.xlu2 }
 0x206   : > { %2545 = vmatmul.msk.bf16.vlgmr.msra.gmra.mxu2 %vm998_vm9, %v990_v5  ;;  %2553 = vmatmul.msk.bf16.vlgmr.msra.gmra.mxu3 %vm998_vm9, %v1108_v38  ;;  %v2694_v41 = vunpack.i.l.bf16 %v2693_v39  ;;  %v2697_v4 = vunpack.i.h.bf16 %v2693_v39 }
 0x208   : > { %v876_v42 = vpack.c.bf16 %v2694_v41, %v2694_v41  ;;  %v892_v34 = vpack.c.bf16 %v2697_v4, %v2697_v4 }
 0x20a   : > { %v976_v51 = vunpack.c.l.b16 %v876_v42  ;;  %v1094_v40 = vunpack.c.l.b16 %v892_v34 }
 0x20d   : > { %v2698_v43 = vpop.trf.xlu2 }
 0x20e   : > { %v2699_v44 = vunpack.i.l.bf16 %v2698_v43  ;;  %v2702_v47 = vunpack.i.h.bf16 %v2698_v43 }
 0x210   : > { %v2765_v49 = vpop.trf.xlu0  ;;  %v877_v50 = vpack.c.bf16 %v2699_v44, %v2699_v44  ;;  %v893_v53 = vpack.c.bf16 %v2702_v47, %v2702_v47 }
 0x211   : > { %v2769_v56 = vunpack.i.h.bf16 %v2765_v49  ;;  %v2766_v57 = vunpack.i.l.bf16 %v2765_v49 }
 0x212   : > { %v977_v54 = vunpack.c.l.b16 %v877_v50  ;;  %v1095_v55 = vunpack.c.l.b16 %v893_v53 }
 0x213   : > { %v922_v0 = vpack.c.bf16 %v2769_v56, %v2769_v56  ;;  %v906_v7 = vpack.c.bf16 %v2766_v57, %v2766_v57 }
 0x214   : > { %v991_v58 = vpack.c.b16 %v977_v54, %v976_v51  ;;  %v1109_v59 = vpack.c.b16 %v1095_v55, %v1094_v40 }
 0x215   : > { %v2703_v62 = vpop.trf.xlu2  ;;  %v1208_v18 = vunpack.c.l.b16 %v906_v7  ;;  %v1324_v45 = vunpack.c.l.b16 %v922_v0 }
 0x216   : > { %2546 = vmatmul.msk.bf16.gmra.mxu2 %vm998_vm9, %v991_v58  ;;  %2554 = vmatmul.msk.bf16.gmra.mxu3 %vm998_vm9, %v1109_v59  ;;  %v2707_v12 = vunpack.i.h.bf16 %v2703_v62  ;;  %v2704_v48 = vunpack.i.l.bf16 %v2703_v62 }
 0x218   : > { %v2770_v10 = vpop.trf.xlu0  ;;  %v894_v16 = vpack.c.bf16 %v2707_v12, %v2707_v12  ;;  %v878_v17 = vpack.c.bf16 %v2704_v48, %v2704_v48 }
 0x219   : > { %v2774_v13 = vunpack.i.h.bf16 %v2770_v10  ;;  %v2771_v52 = vunpack.i.l.bf16 %v2770_v10 }
 0x21a   : > { %v978_v63 = vunpack.c.l.b16 %v878_v17  ;;  %v1096_v27 = vunpack.c.l.b16 %v894_v16 }
 0x21b   : > { %v923_v14 = vpack.c.bf16 %v2774_v13, %v2774_v13  ;;  %v907_v15 = vpack.c.bf16 %v2771_v52, %v2771_v52 }
 0x21d   : > { %v1209_v19 = vunpack.c.l.b16 %v907_v15  ;;  %v1325_v46 = vunpack.c.l.b16 %v923_v14  ;;  %v2708_v20 = vpop.trf.xlu2 }
 0x21e   : > { %v2712_v21 = vunpack.i.h.bf16 %v2708_v20  ;;  %v2709_v22 = vunpack.i.l.bf16 %v2708_v20 }
 0x21f   : > { %v1224_v24 = vpack.c.b16 %v1209_v19, %v1208_v18  ;;  %v1340_v25 = vpack.c.b16 %v1325_v46, %v1324_v45 }
 0x220   : > { %v2775_v3 = vpop.trf.xlu0  ;;  %v895_v2 = vpack.c.bf16 %v2712_v21, %v2712_v21  ;;  %v879_v26 = vpack.c.bf16 %v2709_v22, %v2709_v22 }
 0x221   : > { %2561 = vmatmul.msk.bf16.vlgmr.msrb.gmra.mxu0 %vm998_vm9, %v1224_v24  ;;  %2569 = vmatmul.msk.bf16.vlgmr.msrb.gmra.mxu1 %vm998_vm9, %v1340_v25  ;;  %v2779_v30 = vunpack.i.h.bf16 %v2775_v3  ;;  %v2776_v11 = vunpack.i.l.bf16 %v2775_v3 }
 0x222   : > { %v979_v28 = vunpack.c.l.b16 %v879_v26  ;;  %v1097_v29 = vunpack.c.l.b16 %v895_v2 }
 0x223   : > { %v924_v33 = vpack.c.bf16 %v2779_v30, %v2779_v30  ;;  %v908_v35 = vpack.c.bf16 %v2776_v11, %v2776_v11 }
 0x224   : > { %v992_v6 = vpack.c.b16 %v979_v28, %v978_v63  ;;  %v1110_v31 = vpack.c.b16 %v1097_v29, %v1096_v27 }
 0x225   : > { %v2713_v32 = vpop.trf.xlu2  ;;  %v1210_v5 = vunpack.c.l.b16 %v908_v35  ;;  %v1326_v38 = vunpack.c.l.b16 %v924_v33 }
 0x226   : > { %2547 = vmatmul.msk.bf16.gmra.mxu2 %vm998_vm9, %v992_v6  ;;  %2555 = vmatmul.msk.bf16.gmra.mxu3 %vm998_vm9, %v1110_v31  ;;  %v2717_v61 = vunpack.i.h.bf16 %v2713_v32  ;;  %v2714_v36 = vunpack.i.l.bf16 %v2713_v32 }
 0x228   : > { %v2780_v60 = vpop.trf.xlu0  ;;  %v896_v39 = vpack.c.bf16 %v2717_v61, %v2717_v61  ;;  %v880_v41 = vpack.c.bf16 %v2714_v36, %v2714_v36 }
 0x229   : > { %v2784_v37 = vunpack.i.h.bf16 %v2780_v60  ;;  %v2781_v8 = vunpack.i.l.bf16 %v2780_v60 }
 0x22a   : > { %v980_v40 = vunpack.c.l.b16 %v880_v41  ;;  %v1098_v54 = vunpack.c.l.b16 %v896_v39 }
 0x22b   : > { %v925_v9 = vpack.c.bf16 %v2784_v37, %v2784_v37  ;;  %v909_v1 = vpack.c.bf16 %v2781_v8, %v2781_v8 }
 0x22d   : > { %v1211_v4 = vunpack.c.l.b16 %v909_v1  ;;  %v1327_v42 = vunpack.c.l.b16 %v925_v9  ;;  %v2718_v34 = vpop.trf.xlu2 }
 0x22e   : > { %v2722_v43 = vunpack.i.h.bf16 %v2718_v34  ;;  %v2719_v44 = vunpack.i.l.bf16 %v2718_v34 }
 0x22f   : > { %v1225_v47 = vpack.c.b16 %v1211_v4, %v1210_v5  ;;  %v1341_v49 = vpack.c.b16 %v1327_v42, %v1326_v38 }
 0x230   : > { %v2785_v50 = vpop.trf.xlu0  ;;  %v897_v51 = vpack.c.bf16 %v2722_v43, %v2722_v43  ;;  %v881_v53 = vpack.c.bf16 %v2719_v44, %v2719_v44 }
 0x231   : > { %2562 = vmatmul.msk.bf16.gmra.mxu0 %vm998_vm9, %v1225_v47  ;;  %2570 = vmatmul.msk.bf16.gmra.mxu1 %vm998_vm9, %v1341_v49  ;;  %v2789_v57 = vunpack.i.h.bf16 %v2785_v50  ;;  %v2786_v58 = vunpack.i.l.bf16 %v2785_v50 }
 0x232   : > { %v981_v55 = vunpack.c.l.b16 %v881_v53  ;;  %v1099_v56 = vunpack.c.l.b16 %v897_v51 }
 0x233   : > { %v926_v7 = vpack.c.bf16 %v2789_v57, %v2789_v57  ;;  %v910_v10 = vpack.c.bf16 %v2786_v58, %v2786_v58 }
 0x234   : > { %v993_v59 = vpack.c.b16 %v981_v55, %v980_v40  ;;  %v1111_v62 = vpack.c.b16 %v1099_v56, %v1098_v54 }
 0x235   : > { %v2723_v0 = vpop.trf.xlu2  ;;  %v1212_v17 = vunpack.c.l.b16 %v910_v10  ;;  %v1328_v18 = vunpack.c.l.b16 %v926_v7 }
 0x236   : > { %2548 = vmatmul.msk.bf16.gmra.mxu2 %vm998_vm9, %v993_v59  ;;  %2556 = vmatmul.msk.bf16.gmra.mxu3 %vm998_vm9, %v1111_v62  ;;  %v2727_v48 = vunpack.i.h.bf16 %v2723_v0  ;;  %v2724_v13 = vunpack.i.l.bf16 %v2723_v0 }
 0x238   : > { %v2790_v12 = vpop.trf.xlu0  ;;  %v898_v19 = vpack.c.bf16 %v2727_v48, %v2727_v48  ;;  %v882_v45 = vpack.c.bf16 %v2724_v13, %v2724_v13 }
 0x239   : > { %v2794_v52 = vunpack.i.h.bf16 %v2790_v12  ;;  %v2791_v14 = vunpack.i.l.bf16 %v2790_v12 }
 0x23a   : > { %v982_v27 = vunpack.c.l.b16 %v882_v45  ;;  %v1100_v28 = vunpack.c.l.b16 %v898_v19 }
 0x23b   : > { %v927_v15 = vpack.c.bf16 %v2794_v52, %v2794_v52  ;;  %v911_v16 = vpack.c.bf16 %v2791_v14, %v2791_v14 }
 0x23d   : > { %v1213_v46 = vunpack.c.l.b16 %v911_v16  ;;  %v1329_v20 = vunpack.c.l.b16 %v927_v15  ;;  %v2728_v21 = vpop.trf.xlu2 }
 0x23e   : > { %v2732_v22 = vunpack.i.h.bf16 %v2728_v21  ;;  %v2729_v24 = vunpack.i.l.bf16 %v2728_v21 }
 0x23f   : > { %v1226_v25 = vpack.c.b16 %v1213_v46, %v1212_v17  ;;  %v1342_v3 = vpack.c.b16 %v1329_v20, %v1328_v18 }
 0x240   : > { %v2795_v2 = vpop.trf.xlu0  ;;  %v899_v26 = vpack.c.bf16 %v2732_v22, %v2732_v22  ;;  %v883_v63 = vpack.c.bf16 %v2729_v24, %v2729_v24  ;;  %v740_v24 = vpop.f32.mrf.mxu1 }
 0x241   : > { %2563 = vmatmul.msk.bf16.gmra.mxu0 %vm998_vm9, %v1226_v25  ;;  %2571 = vmatmul.msk.bf16.gmra.mxu1 %vm998_vm9, %v1342_v3  ;;  %v2799_v11 = vunpack.i.h.bf16 %v2795_v2  ;;  %v2796_v6 = vunpack.i.l.bf16 %v2795_v2 }
 0x242   : > { %v983_v29 = vunpack.c.l.b16 %v883_v63  ;;  %v1101_v30 = vunpack.c.l.b16 %v899_v26 }
 0x243   : > { %v928_v35 = vpack.c.bf16 %v2799_v11, %v2799_v11  ;;  %v912_v60 = vpack.c.bf16 %v2796_v6, %v2796_v6 }
 0x244   : > { %v994_v31 = vpack.c.b16 %v983_v29, %v982_v27  ;;  %v1112_v32 = vpack.c.b16 %v1101_v30, %v1100_v28 }
 0x245   : > { %v2733_v33 = vpop.trf.xlu2  ;;  %v1214_v38 = vunpack.c.l.b16 %v912_v60  ;;  %v1330_v39 = vunpack.c.l.b16 %v928_v35 }
 0x246   : > { %2549 = vmatmul.msk.bf16.gmra.mxu2 %vm998_vm9, %v994_v31  ;;  %2557 = vmatmul.msk.bf16.gmra.mxu3 %vm998_vm9, %v1112_v32  ;;  %v2737_v36 = vunpack.i.h.bf16 %v2733_v33  ;;  %v2734_v37 = vunpack.i.l.bf16 %v2733_v33 }
 0x248   : > { %v2800_v61 = vpop.trf.xlu0  ;;  %v900_v41 = vpack.c.bf16 %v2737_v36, %v2737_v36  ;;  %v884_v4 = vpack.c.bf16 %v2734_v37, %v2734_v37  ;;  %v741_v60 = vpop.f32.mrf.mxu1 }
 0x249   : > { %v2804_v8 = vunpack.i.h.bf16 %v2800_v61  ;;  %v2801_v9 = vunpack.i.l.bf16 %v2800_v61 }
 0x24a   : > { %v984_v54 = vunpack.c.l.b16 %v884_v4  ;;  %v1102_v55 = vunpack.c.l.b16 %v900_v41 }
 0x24b   : > { %v929_v1 = vpack.c.bf16 %v2804_v8, %v2804_v8  ;;  %v913_v5 = vpack.c.bf16 %v2801_v9, %v2801_v9 }
 0x24d   : > { %v1215_v42 = vunpack.c.l.b16 %v913_v5  ;;  %v1331_v34 = vunpack.c.l.b16 %v929_v1  ;;  %v2738_v43 = vpop.trf.xlu2 }
 0x24e   : > { %v2742_v44 = vunpack.i.h.bf16 %v2738_v43  ;;  %v2739_v47 = vunpack.i.l.bf16 %v2738_v43 }
 0x24f   : > { %v1227_v49 = vpack.c.b16 %v1215_v42, %v1214_v38  ;;  %v1343_v50 = vpack.c.b16 %v1331_v34, %v1330_v39 }
 0x250   : > { %v2805_v51 = vpop.trf.xlu0  ;;  %v901_v53 = vpack.c.bf16 %v2742_v44, %v2742_v44  ;;  %v885_v40 = vpack.c.bf16 %v2739_v47, %v2739_v47  ;;  %v743_v43 = vpop.f32.mrf.mxu1 }
 0x251   : > { %2564 = vmatmul.msk.bf16.gmra.mxu0 %vm998_vm9, %v1227_v49  ;;  %2572 = vmatmul.msk.bf16.gmra.mxu1 %vm998_vm9, %v1343_v50  ;;  %v2809_v58 = vunpack.i.h.bf16 %v2805_v51  ;;  %v2806_v59 = vunpack.i.l.bf16 %v2805_v51 }
 0x252   : > { %v985_v56 = vunpack.c.l.b16 %v885_v40  ;;  %v1103_v57 = vunpack.c.l.b16 %v901_v53 }
 0x253   : > { %v930_v10 = vpack.c.bf16 %v2809_v58, %v2809_v58  ;;  %v914_v12 = vpack.c.bf16 %v2806_v59, %v2806_v59  ;;  %v942_v59 = vld [vmem:[%s4634_s2] sm:$0xff] }
 0x254   : > { %v995_v62 = vpack.c.b16 %v985_v56, %v984_v54  ;;  %v1113_v0 = vpack.c.b16 %v1103_v57, %v1102_v55  ;;  %v3561_v57 = vpop.f32.mrf.mxu0 }
 0x255   : > { %v2743_v7 = vpop.trf.xlu2  ;;  %v1216_v18 = vunpack.c.l.b16 %v914_v12  ;;  %v1332_v19 = vunpack.c.l.b16 %v930_v10  ;;  %4691 = vst [vmem:[#allocation8_spill] sm:$0xff] %v3561_v57 }
 0x256   : > { %2550 = vmatmul.msk.bf16.gmra.mxu2 %vm998_vm9, %v995_v62  ;;  %2558 = vmatmul.msk.bf16.gmra.mxu3 %vm998_vm9, %v1113_v0  ;;  %v2747_v13 = vunpack.i.h.bf16 %v2743_v7  ;;  %v2744_v52 = vunpack.i.l.bf16 %v2743_v7 }
 0x258   : > { %v2810_v48 = vpop.trf.xlu0  ;;  %v902_v45 = vpack.c.bf16 %v2747_v13, %v2747_v13  ;;  %v886_v46 = vpack.c.bf16 %v2744_v52, %v2744_v52  ;;  %v744_v56 = vpop.f32.mrf.mxu1 }
 0x259   : > { %v2814_v14 = vunpack.i.h.bf16 %v2810_v48  ;;  %v2811_v15 = vunpack.i.l.bf16 %v2810_v48  ;;  %v943_v48 = vld [vmem:[%s4634_s2 + $0x8] sm:$0xff] }
 0x25a   : > { %v986_v29 = vunpack.c.l.b16 %v886_v46  ;;  %v1104_v30 = vunpack.c.l.b16 %v902_v45 }
 0x25b   : > { %v931_v16 = vpack.c.bf16 %v2814_v14, %v2814_v14  ;;  %v915_v17 = vpack.c.bf16 %v2811_v15, %v2811_v15 }
 0x25c   : > { %v3563_v58 = vpop.f32.mrf.mxu0 }
 0x25d   : > { %v1217_v20 = vunpack.c.l.b16 %v915_v17  ;;  %v1333_v21 = vunpack.c.l.b16 %v931_v16  ;;  %v2748_v22 = vpop.trf.xlu2  ;;  %4692 = vst [vmem:[#allocation9_spill] sm:$0xff] %v3563_v58 }
 0x25e   : > { %v2752_v25 = vunpack.i.h.bf16 %v2748_v22  ;;  %v2749_v3 = vunpack.i.l.bf16 %v2748_v22 }
 0x25f   : > { %v1228_v2 = vpack.c.b16 %v1217_v20, %v1216_v18  ;;  %v1344_v26 = vpack.c.b16 %v1333_v21, %v1332_v19 }
 0x260   : > { %v3551_v63 = vpop.trf.xlu0  ;;  %v903_v27 = vpack.c.bf16 %v2752_v25, %v2752_v25  ;;  %v887_v28 = vpack.c.bf16 %v2749_v3, %v2749_v3 }
 0x261   : > { %2565 = vmatmul.msk.bf16.gmra.mxu0 %vm998_vm9, %v1228_v2  ;;  %2573 = vmatmul.msk.bf16.gmra.mxu1 %vm998_vm9, %v1344_v26  ;;  %v2819_v31 = vunpack.i.h.bf16 %v3551_v63  ;;  %v2816_v15 = vunpack.i.l.bf16 %v3551_v63 }
 0x262   : > { %v987_v11 = vunpack.c.l.b16 %v887_v28  ;;  %v1105_v6 = vunpack.c.l.b16 %v903_v27  ;;  %v944_v27 = vld [vmem:[%s4634_s2 + $0x10] sm:$0xff] }
 0x263   : > { %v932_v61 = vpack.c.bf16 %v2819_v31, %v2819_v31  ;;  %v916_v45 = vpack.c.bf16 %v2816_v15, %v2816_v15 }
 0x264   : > { %v996_v32 = vpack.c.b16 %v987_v11, %v986_v29  ;;  %v1114_v33 = vpack.c.b16 %v1105_v6, %v1104_v30  ;;  %v3572_v12 = vpop.f32.mrf.mxu0 }
 0x265   : > { %v2753_v35 = vpop.trf.xlu2  ;;  %v1334_v5 = vunpack.c.l.b16 %v932_v61  ;;  %4695 = vst [vmem:[#allocation12_spill] sm:$0xff] %v3572_v12  ;;  %v1218_v22 = vunpack.c.l.b16 %v916_v45 }
 0x266   : > { %2551 = vmatmul.msk.bf16.gmra.mxu2 %vm998_vm9, %v996_v32  ;;  %2559 = vmatmul.msk.bf16.gmra.mxu3 %vm998_vm9, %v1114_v33  ;;  %v2757_v37 = vunpack.i.h.bf16 %v2753_v35  ;;  %v2754_v8 = vunpack.i.l.bf16 %v2753_v35  ;;  %v3609_v33 = vld [vmem:[%s4634_s2 + $0x18] sm:$0xff] }
 0x268   : > { %v2820_v36 = vpop.trf.xlu0  ;;  %v904_v38 = vpack.c.bf16 %v2757_v37, %v2757_v37  ;;  %v888_v39 = vpack.c.bf16 %v2754_v8, %v2754_v8 }
 0x269   : > { %v2824_v9 = vunpack.i.h.bf16 %v2820_v36  ;;  %v2821_v16 = vunpack.i.l.bf16 %v2820_v36 }
 0x26a   : > { %v988_v50 = vunpack.c.l.b16 %v888_v39  ;;  %v1106_v51 = vunpack.c.l.b16 %v904_v38 }
 0x26b   : > { %v933_v1 = vpack.c.bf16 %v2824_v9, %v2824_v9  ;;  %v917_v46 = vpack.c.bf16 %v2821_v16, %v2821_v16 }
 0x26c   : > { %v3583_v17 = vpop.f32.mrf.mxu0 }
 0x26d   : > { %v1335_v41 = vunpack.c.l.b16 %v933_v1  ;;  %v2758_v4 = vpop.trf.xlu2  ;;  %4696 = vst [vmem:[#allocation13_spill] sm:$0xff] %v3583_v17  ;;  %v1219_v24 = vunpack.c.l.b16 %v917_v46  ;;  %v3623_v1 = vld [vmem:[%s4634_s2 + $0x20] sm:$0xff] }
 0x26e   : > { %v2762_v42 = vunpack.i.h.bf16 %v2758_v4  ;;  %v2759_v34 = vunpack.i.l.bf16 %v2758_v4 }
 0x26f   : > { %v1345_v44 = vpack.c.b16 %v1335_v41, %v1334_v5  ;;  %v1229_v2 = vpack.c.b16 %v1219_v24, %v1218_v22  ;;  %v3629_v5 = vld [vmem:[%s4634_s2 + $0x28] sm:$0xff] }
 0x270   : > { %v905_v47 = vpack.c.bf16 %v2762_v42, %v2762_v42  ;;  %v889_v49 = vpack.c.bf16 %v2759_v34, %v2759_v34 }
 0x271   : > { %2574 = vmatmul.msk.bf16.gmra.mxu1 %vm998_vm9, %v1345_v44  ;;  %2566 = vmatmul.msk.bf16.gmra.mxu0 %vm998_vm9, %v1229_v2 }
 0x272   : > { %v989_v53 = vunpack.c.l.b16 %v889_v49  ;;  %v1107_v40 = vunpack.c.l.b16 %v905_v47 }
 0x274   : > { %v997_v54 = vpack.c.b16 %v989_v53, %v988_v50  ;;  %v1115_v55 = vpack.c.b16 %v1107_v40, %v1106_v51  ;;  %v2825_v50 = vpop.trf.xlu0 }
 0x276   : > { %2552 = vmatmul.msk.bf16.gmra.mxu2 %vm998_vm9, %v997_v54  ;;  %2560 = vmatmul.msk.bf16.gmra.mxu3 %vm998_vm9, %v1115_v55  ;;  %v2829_v54 = vunpack.i.h.bf16 %v2825_v50  ;;  %v2826_v55 = vunpack.i.l.bf16 %v2825_v50 }
 0x27c   : > { %v2830_v15 = vpop.trf.xlu0 }
 0x27d   : > { %v2834_v16 = vunpack.i.h.bf16 %v2830_v15 }
 0x284   : > { %v2835_v50 = vpop.trf.xlu0 }
 0x289   : > { %v1036_v62 = vpop.f32.mrf.mxu2  ;;  %v1152_v0 = vpop.f32.mrf.mxu3 }
 0x28a   : > { %v3568_v7 = vadd.f32 %v1036_v62, %v942_v59  ;;  %v3570_v10 = vadd.f32 %v1152_v0, %v942_v59 }
 0x28c   : > { %4693 = vst [vmem:[#allocation10_spill] sm:$0xff] %v3568_v7  ;;  %1456 = vmax.xlane.f32.xlu2 %v3570_v10  ;;  %1424 = vmax.xlane.f32.xlu1 %v3568_v7 }
 0x28d   : > { %4694 = vst [vmem:[#allocation11_spill] sm:$0xff] %v3570_v10 }
 0x291   : > { %v1038_v13 = vpop.f32.mrf.mxu2  ;;  %v1154_v52 = vpop.f32.mrf.mxu3 }
 0x292   : > { %v3579_v14 = vadd.f32 %v1038_v13, %v943_v48  ;;  %v3616_v37 = vadd.f32 %v1154_v52, %v943_v48  ;;  %v934_v13 = vpack.c.bf16 %v2829_v54, %v2829_v54  ;;  %v918_v52 = vpack.c.bf16 %v2826_v55, %v2826_v55  ;;  %v3712_v54 = vld [vmem:[%s4634_s2 + $0x38] sm:$0xff] }
 0x294   : > { %1426 = vmax.xlane.f32.xlu0 %v3579_v14  ;;  %4701 = vst [vmem:[#allocation18_spill] sm:$0xff] %v3616_v37  ;;  %v1336_v24 = vunpack.c.l.b16 %v934_v13  ;;  %v1220_v2 = vunpack.c.l.b16 %v918_v52 }
 0x299   : > { %v1041_v18 = vpop.f32.mrf.mxu2  ;;  %v1157_v19 = vpop.f32.mrf.mxu3 }
 0x29a   : > { %v3595_v30 = vadd.f32 %v1157_v19, %v944_v27  ;;  %v3599_v6 = vadd.f32 %v1041_v18, %v944_v27  ;;  %v2831_v18 = vunpack.i.l.bf16 %v2830_v15  ;;  %v3673_v19 = vld [vmem:[%s4634_s2 + $0x40] sm:$0xff] }
 0x29c   : > { %v919_v22 = vpack.c.bf16 %v2831_v18, %v2831_v18 }
 0x29e   : > { %v1268_v20 = vpop.f32.mrf.mxu0  ;;  %v1384_v21 = vpop.f32.mrf.mxu1 }
 0x29f   : > { %v3585_v25 = vadd.f32 %v1268_v20, %v942_v59  ;;  %v3587_v3 = vadd.f32 %v1384_v21, %v942_v59  ;;  %v935_v21 = vpack.c.bf16 %v2834_v16, %v2834_v16 }
 0x2a1   : > { %4697 = vst [vmem:[#allocation14_spill] sm:$0xff] %v3585_v25  ;;  %v1159_v26 = vpop.f32.mrf.mxu3  ;;  %1520 = vmax.xlane.f32.xlu2 %v3587_v3  ;;  %v1043_v63 = vpop.f32.mrf.mxu2  ;;  %1488 = vmax.xlane.f32.xlu1 %v3585_v25 }
 0x2a2   : > { %4698 = vst [vmem:[#allocation15_spill] sm:$0xff] %v3587_v3  ;;  %v3612_v61 = vadd.f32 %v1043_v63, %v3609_v33  ;;  %v3663_v0 = vadd.f32 %v1159_v26, %v3609_v33  ;;  %v1337_v26 = vunpack.c.l.b16 %v935_v21  ;;  %v1221_v63 = vunpack.c.l.b16 %v919_v22 }
 0x2a6   : > { %v1270_v28 = vpop.f32.mrf.mxu0  ;;  %v1386_v29 = vpop.f32.mrf.mxu1 }
 0x2a7   : > { %v3597_v11 = vadd.f32 %v1270_v28, %v943_v48  ;;  %v3651_v51 = vadd.f32 %v1386_v29, %v943_v48 }
 0x2a9   : > { %4699 = vst [vmem:[#allocation16_spill] sm:$0xff] %v3597_v11  ;;  %1460 = vmax.xlane.f32.xlu2 %v3595_v30  ;;  %1490 = vmax.xlane.f32.xlu0 %v3597_v11  ;;  %v1046_v31 = vpop.f32.mrf.mxu2  ;;  %v3603_v32 = vpop.f32.mrf.mxu3 }
 0x2aa   : > { %1428 = vmax.xlane.f32.xlu1 %v3599_v6  ;;  %v3632_v38 = vadd.f32 %v1046_v31, %v3623_v1  ;;  %4704 = vst [vmem:[#allocation21_spill] sm:$0xff] %v3651_v51  ;;  %v1230_v31 = vpack.c.b16 %v1221_v63, %v1220_v2 }
 0x2ac   : > { %2567 = vmatmul.msk.bf16.gmra.mxu0 %vm998_vm9, %v1230_v31 }
 0x2ae   : > { %v1273_v35 = vpop.f32.mrf.mxu0  ;;  %v1389_v60 = vpop.f32.mrf.mxu1 }
 0x2af   : > { %v3614_v36 = vadd.f32 %v1389_v60, %v944_v27  ;;  %v3637_v42 = vadd.f32 %v1273_v35, %v944_v27  ;;  %v1346_v35 = vpack.c.b16 %v1337_v26, %v1336_v24  ;;  %v3688_v60 = vadd.f32 %v3603_v32, %v3623_v1 }
 0x2b1   : > { %4700 = vst [vmem:[#allocation17_spill] sm:$0xff] %v3614_v36  ;;  %1524 = vmax.xlane.f32.xlu2 %v3614_v36  ;;  %1430 = vmax.xlane.f32.xlu0 %v3612_v61  ;;  %v1048_v8 = vpop.f32.mrf.mxu2  ;;  %v1164_v9 = vpop.f32.mrf.mxu3 }
 0x2b2   : > { %1458 = vmax.xlane.f32.xlu1 %v3616_v37  ;;  %v3635_v39 = vadd.f32 %v1048_v8, %v3629_v5  ;;  %4702 = vst [vmem:[#allocation19_spill] sm:$0xff] %v3637_v42  ;;  %v3684_v29 = vadd.f32 %v1164_v9, %v3629_v5  ;;  %v3694_v8 = vld [vmem:[%s4634_s2 + $0x48] sm:$0xff]  ;;  %v3702_v9 = vld [vmem:[%s4634_s2 + $0x30] sm:$0xff]  ;;  %2575 = vmatmul.msk.bf16.gmra.mxu1 %vm998_vm9, %v1346_v35 }
 0x2b3   : > { %v3767_v35 = vld [vmem:[%s4634_s2 + $0x50] sm:$0xff] }
 0x2b6   : > { %v1275_v41 = vpop.f32.mrf.mxu0  ;;  %v1391_v4 = vpop.f32.mrf.mxu1 }
 0x2b7   : > { %v3649_v49 = vadd.f32 %v1275_v41, %v3609_v33  ;;  %v3721_v15 = vadd.f32 %v1391_v4, %v3609_v33 }
 0x2b9   : > { %1434 = vmax.xlane.f32.xlu2 %v3635_v39  ;;  %1432 = vmax.xlane.f32.xlu0 %v3632_v38  ;;  %v3641_v34 = vpop.f32.mrf.mxu2  ;;  %v3643_v43 = vpop.f32.mrf.mxu3  ;;  %4703 = vst [vmem:[#allocation20_spill] sm:$0xff] %v3649_v49 }
 0x2ba   : > { %1492 = vmax.xlane.f32.xlu1 %v3637_v42  ;;  %4707 = vst [vmem:[#allocation24_spill] sm:$0xff] %v3721_v15  ;;  %v3738_v33 = vadd.f32 %v3641_v34, %v3702_v9 }
 0x2be   : > { %v1278_v44 = vpop.f32.mrf.mxu0  ;;  %v3646_v47 = vpop.f32.mrf.mxu1 }
 0x2bf   : > { %v3660_v56 = vadd.f32 %v1278_v44, %v3623_v1  ;;  %v3755_v34 = vadd.f32 %v3646_v47, %v3623_v1 }
 0x2c1   : > { %1494 = vmax.xlane.f32.xlu0 %v3649_v49  ;;  %v3654_v53 = vpop.f32.mrf.mxu2  ;;  %v3656_v40 = vpop.f32.mrf.mxu3  ;;  %4705 = vst [vmem:[#allocation22_spill] sm:$0xff] %v3660_v56 }
 0x2c2   : > { %1522 = vmax.xlane.f32.xlu1 %v3651_v51  ;;  %4710 = vst [vmem:[#allocation27_spill] sm:$0xff] %v3755_v34 }
 0x2c6   : > { %v1280_v59 = vpop.f32.mrf.mxu0  ;;  %v1396_v62 = vpop.f32.mrf.mxu1 }
 0x2c7   : > { %v3666_v48 = vadd.f32 %v1280_v59, %v3629_v5  ;;  %v3731_v21 = vadd.f32 %v1396_v62, %v3629_v5 }
 0x2c9   : > { %4706 = vst [vmem:[#allocation23_spill] sm:$0xff] %v3666_v48  ;;  %1498 = vmax.xlane.f32.xlu2 %v3666_v48  ;;  %1496 = vmax.xlane.f32.xlu0 %v3660_v56  ;;  %v3675_v45 = vpop.f32.mrf.mxu2  ;;  %v1172_v46 = vpop.f32.mrf.mxu3 }
 0x2ca   : > { %1462 = vmax.xlane.f32.xlu1 %v3663_v0  ;;  %v3679_v20 = vadd.f32 %v1172_v46, %v3673_v19  ;;  %v2840_v46 = vpop.trf.xlu0  ;;  %4708 = vst [vmem:[#allocation25_spill] sm:$0xff] %v3731_v21 }
 0x2cb   : > { %v2844_v23 = vunpack.i.h.bf16 %v2840_v46  ;;  %v2841_v12 = vunpack.i.l.bf16 %v2840_v46 }
 0x2cd   : > { %v937_v58 = vpack.c.bf16 %v2844_v23, %v2844_v23  ;;  %v921_v3 = vpack.c.bf16 %v2841_v12, %v2841_v12  ;;  %v3809_v23 = vadd.f32 %v3675_v45, %v3673_v19 }
 0x2ce   : > { %v1283_v27 = vpop.f32.mrf.mxu0  ;;  %v3681_v28 = vpop.f32.mrf.mxu1 }
 0x2cf   : > { %v3715_v55 = vadd.f32 %v1283_v27, %v3702_v9  ;;  %v1339_v42 = vunpack.c.l.b16 %v937_v58  ;;  %v1223_v11 = vunpack.c.l.b16 %v921_v3  ;;  %v3822_v58 = vadd.f32 %v3656_v40, %v3712_v54 }
 0x2d1   : > { %1466 = vmax.xlane.f32.xlu0 %v3684_v29  ;;  %v3696_v41 = vpop.f32.mrf.mxu2  ;;  %v1174_v44 = vpop.f32.mrf.mxu3 }
 0x2d2   : > { %1464 = vmax.xlane.f32.xlu1 %v3688_v60  ;;  %v3706_v32 = vadd.f32 %v1174_v44, %v3694_v8 }
 0x2d6   : > { %v1285_v59 = vpop.f32.mrf.mxu0  ;;  %v1401_v13 = vpop.f32.mrf.mxu1 }
 0x2d7   : > { %v3718_v52 = vadd.f32 %v1285_v59, %v3712_v54  ;;  %v3748_v5 = vadd.f32 %v1401_v13, %v3712_v54  ;;  %v3777_v59 = vadd.f32 %v3654_v53, %v3712_v54  ;;  %v3793_v53 = vadd.f32 %v3643_v43, %v3702_v9  ;;  %v3805_v43 = vld [vmem:[%s4634_s2 + $0x78] sm:$0xff] }
 0x2d9   : > { %1502 = vmax.xlane.f32.xlu2 %v3718_v52  ;;  %1500 = vmax.xlane.f32.xlu0 %v3715_v55  ;;  %v3725_v16 = vpop.f32.mrf.mxu2  ;;  %v3727_v18 = vpop.f32.mrf.mxu3  ;;  %4709 = vst [vmem:[#allocation26_spill] sm:$0xff] %v3748_v5 }
 0x2da   : > { %1526 = vmax.xlane.f32.xlu1 %v3721_v15 }
 0x2de   : > { %v1288_v22 = vpop.f32.mrf.mxu0  ;;  %v1404_v24 = vpop.f32.mrf.mxu1 }
 0x2df   : > { %v3734_v2 = vadd.f32 %v1288_v22, %v3673_v19  ;;  %v3770_v44 = vadd.f32 %v1404_v24, %v3673_v19  ;;  %v2839_v24 = vunpack.i.h.bf16 %v2835_v50 }
 0x2e1   : > { %1504 = vmax.xlane.f32.xlu2 %v3734_v2  ;;  %1530 = vmax.xlane.f32.xlu0 %v3731_v21  ;;  %v3742_v4 = vpop.f32.mrf.mxu2  ;;  %v3744_v26 = vpop.f32.mrf.mxu3  ;;  %v936_v17 = vpack.c.bf16 %v2839_v24, %v2839_v24 }
 0x2e2   : > { %1436 = vmax.xlane.f32.xlu1 %v3738_v33 }
 0x2e3   : > { %v1338_v46 = vunpack.c.l.b16 %v936_v17 }
 0x2e6   : > { %v1406_v62 = vpop.f32.mrf.mxu1 }
 0x2e7   : > { %v3751_v63 = vadd.f32 %v1406_v62, %v3694_v8  ;;  %v2836_v62 = vunpack.i.l.bf16 %v2835_v50 }
 0x2e9   : > { %1538 = vmax.xlane.f32.xlu2 %v3751_v63  ;;  %1534 = vmax.xlane.f32.xlu0 %v3748_v5  ;;  %v3759_v27 = vpop.f32.mrf.mxu2  ;;  %v3761_v31 = vpop.f32.mrf.mxu3  ;;  %v920_v57 = vpack.c.bf16 %v2836_v62, %v2836_v62  ;;  %v1347_v62 = vpack.c.b16 %v1339_v42, %v1338_v46  ;;  %v3838_v42 = vadd.f32 %v3696_v41, %v3694_v8 }
 0x2ea   : > { %1528 = vmax.xlane.f32.xlu1 %v3755_v34  ;;  %v3850_v41 = vadd.f32 %v3725_v16, %v3767_v35 }
 0x2eb   : > { %v1222_v25 = vunpack.c.l.b16 %v920_v57  ;;  %2576 = vmatmul.msk.bf16.gmra.mxu1 %vm998_vm9, %v1347_v62  ;;  %v3817_v57 = vpop.permute.xlu1 %516 }
 0x2ec   : > { %4711 = vst [vmem:[#allocation28_spill] sm:$0xff] %v3817_v57 }
 0x2ed   : > { %v1231_v24 = vpack.c.b16 %v1223_v11, %v1222_v25  ;;  %v3829_v25 = vadd.f32 %v3681_v28, %v3702_v9 }
 0x2ee   : > { %v1409_v1 = vpop.f32.mrf.mxu1 }
 0x2ef   : > { %v3773_v47 = vadd.f32 %v1409_v1, %v3767_v35  ;;  %v3789_v1 = vld [vmem:[%s4634_s2 + $0x70] sm:$0xff]  ;;  %2568 = vmatmul.msk.bf16.gmra.mxu0 %vm998_vm9, %v1231_v24 }
 0x2f1   : > { %1540 = vmax.xlane.f32.xlu2 %v3773_v47  ;;  %1536 = vmax.xlane.f32.xlu0 %v3770_v44  ;;  %v3781_v13 = vpop.f32.mrf.mxu2  ;;  %v3783_v22 = vpop.f32.mrf.mxu3 }
 0x2f2   : > { %1438 = vmax.xlane.f32.xlu1 %v3777_v59 }
 0x2f9   : > { %v3795_v51 = vpop.f32.mrf.mxu2  ;;  %v1187_v15 = vpop.f32.mrf.mxu3 }
 0x2fa   : > { %1468 = vmax.xlane.f32.xlu1 %v3793_v53  ;;  %v3799_v50 = vadd.f32 %v1187_v15, %v3789_v1  ;;  %v4001_v37 = vadd.f32 %v3795_v51, %v3789_v1 }
 0x2fc   : > { %1484 = vmax.xlane.f32.xlu0 %v3799_v50 }
 0x2ff   : > { %v3825_v17 = vpop.xlane.xlu1 %1424 }
 0x300   : > { %4712 = vst [vmem:[#allocation29_spill] sm:$0xff] %v3825_v17 }
 0x301   : > { %v1073_v12 = vpop.f32.mrf.mxu2 }
 0x302   : > { %1440 = vmax.xlane.f32.xlu1 %v3809_v23  ;;  %v3813_v15 = vadd.f32 %v1073_v12, %v3805_v43 }
 0x304   : > { %1454 = vmax.xlane.f32.xlu2 %v3813_v15 }
 0x307   : > { %v3832_v3 = vpop.xlane.xlu0 %1426 }
 0x30a   : > { %1470 = vmax.xlane.f32.xlu1 %v3822_v58 }
 0x312   : > { %1532 = vmax.xlane.f32.xlu1 %v3829_v25 }
 0x314   : > { %v3834_v11 = vpop.xlane.xlu1 %1488 }
 0x315   : > { %4713 = vst [vmem:[#allocation30_spill] sm:$0xff] %v3834_v11 }
 0x31a   : > { %1442 = vmax.xlane.f32.xlu1 %v3838_v42 }
 0x31c   : > { %v3841_v40 = vpop.xlane.xlu0 %1490 }
 0x31d   : > { %4714 = vst [vmem:[#allocation31_spill] sm:$0xff] %v3841_v40  ;;  %v1429_v19 = vpop.xlane.xlu1 %1428 }
 0x31e   : > { %v1554_v45 = vsub.f32 %v3599_v6, %v1429_v19 }
 0x320   : > { %v1620_v54 = vmul.f32 1.442695, %v1554_v45 }
 0x322   : > { %1472 = vmax.xlane.f32.xlu1 %v3679_v20  ;;  %2855 = vpow2.f32 %v1620_v54  ;;  %v1290_v54 = vpop.f32.mrf.mxu0 }
 0x324   : > { %v1431_v28 = vpop.xlane.xlu0 %1430 }
 0x325   : > { %v1555_v9 = vsub.f32 %v3612_v61, %v1431_v28  ;;  %v3846_v46 = vpop.xlane.xlu1 %1458 }
 0x326   : > { %4715 = vst [vmem:[#allocation32_spill] sm:$0xff] %v3846_v46 }
 0x327   : > { %v1622_v12 = vmul.f32 1.442695, %v1555_v9 }
 0x328   : > { %v3852_v24 = vpop.eup %2855 }
 0x329   : > { %2857 = vpow2.f32 %v1622_v12  ;;  %1748 = vadd.xlane.f32.xlu0 %v3852_v24  ;;  %v3870_v12 = vadd.f32 %v1290_v54, %v3694_v8  ;;  %v3886_v8 = vpop.xlane.xlu2 %1456 }
 0x32a   : > { %1444 = vmax.xlane.f32.xlu1 %v3850_v41  ;;  %4721 = vst [vmem:[#allocation38_spill] sm:$0xff] %v3886_v8 }
 0x32c   : > { %v1433_v6 = vpop.xlane.xlu0 %1432 }
 0x32d   : > { %v1556_v62 = vsub.f32 %v3632_v38, %v1433_v6  ;;  %v3857_v19 = vpop.xlane.xlu1 %1492  ;;  %v3879_v6 = vld [vmem:[%s4634_s2 + $0x58] sm:$0xff] }
 0x32e   : > { %4716 = vst [vmem:[#allocation33_spill] sm:$0xff] %v3857_v19  ;;  %v3884_v57 = vadd.f32 %v3742_v4, %v3879_v6 }
 0x32f   : > { %v1624_v61 = vmul.f32 1.442695, %v1556_v62  ;;  %v3859_v45 = vpop.eup %2857 }
 0x330   : > { %1750 = vadd.xlane.f32.xlu2 %v3859_v45 }
 0x331   : > { %2859 = vpow2.f32 %v1624_v61 }
 0x332   : > { %1474 = vmax.xlane.f32.xlu1 %v3706_v32 }
 0x334   : > { %v3863_v16 = vpop.xlane.xlu0 %1494 }
 0x335   : > { %4717 = vst [vmem:[#allocation34_spill] sm:$0xff] %v3863_v16  ;;  %v3865_v28 = vpop.xlane.xlu1 %1522 }
 0x336   : > { %4718 = vst [vmem:[#allocation35_spill] sm:$0xff] %v3865_v28 }
 0x337   : > { %v3867_v9 = vpop.eup %2859 }
 0x338   : > { %4719 = vst [vmem:[#allocation36_spill] sm:$0xff] %v3867_v9  ;;  %1752 = vadd.xlane.f32.xlu2 %v3867_v9 }
 0x33a   : > { %1506 = vmax.xlane.f32.xlu1 %v3870_v12 }
 0x33c   : > { %v3874_v38 = vpop.xlane.xlu0 %1496 }
 0x33d   : > { %4720 = vst [vmem:[#allocation37_spill] sm:$0xff] %v3874_v38  ;;  %v1463_v62 = vpop.xlane.xlu1 %1462 }
 0x33e   : > { %v1571_v61 = vsub.f32 %v3663_v0, %v1463_v62  ;;  %v3893_v0 = vadd.f32 %v3727_v18, %v3767_v35  ;;  %v3895_v62 = vpop.xlane.xlu2 %1520 }
 0x33f   : > { %4722 = vst [vmem:[#allocation39_spill] sm:$0xff] %v3895_v62 }
 0x340   : > { %v1654_v54 = vmul.f32 1.442695, %v1571_v61 }
 0x342   : > { %1446 = vmax.xlane.f32.xlu1 %v3884_v57  ;;  %2861 = vpow2.f32 %v1654_v54 }
 0x344   : > { %v1467_v28 = vpop.xlane.xlu0 %1466 }
 0x345   : > { %v1573_v11 = vsub.f32 %v3684_v29, %v1467_v28  ;;  %v1465_v19 = vpop.xlane.xlu1 %1464 }
 0x346   : > { %v1572_v9 = vsub.f32 %v3688_v60, %v1465_v19  ;;  %v1293_v60 = vpop.f32.mrf.mxu0  ;;  %v3911_v19 = vpop.xlane.xlu2 %1460 }
 0x347   : > { %v1658_v40 = vmul.f32 1.442695, %v1573_v11  ;;  %v3908_v18 = vadd.f32 %v1293_v60, %v3767_v35 }
 0x348   : > { %v1656_v4 = vmul.f32 1.442695, %v1572_v9  ;;  %v3897_v49 = vpop.eup %2861 }
 0x349   : > { %4723 = vst [vmem:[#allocation40_spill] sm:$0xff] %v3897_v49  ;;  %2863 = vpow2.f32 %v1658_v40  ;;  %1782 = vadd.xlane.f32.xlu0 %v3897_v49  ;;  %v3918_v40 = vld [vmem:[%s4634_s2 + $0x60] sm:$0xff] }
 0x34a   : > { %2865 = vpow2.f32 %v1656_v4  ;;  %1476 = vmax.xlane.f32.xlu1 %v3893_v0  ;;  %v3924_v61 = vadd.f32 %v3759_v27, %v3918_v40  ;;  %v3933_v4 = vadd.f32 %v3744_v26, %v3879_v6  ;;  %v3946_v26 = vld [vmem:[%s4634_s2 + $0x68] sm:$0xff] }
 0x34b   : > { %v4016_v51 = vadd.f32 %v3783_v22, %v3946_v26 }
 0x34d   : > { %v3901_v29 = vpop.xlane.xlu1 %1526 }
 0x34e   : > { %4724 = vst [vmem:[#allocation41_spill] sm:$0xff] %v3901_v29  ;;  %v3927_v35 = vpop.xlane.xlu2 %1524  ;;  %v1295_v60 = vpop.f32.mrf.mxu0 }
 0x34f   : > { %v3903_v28 = vpop.eup %2863  ;;  %4725 = vst [vmem:[#allocation42_spill] sm:$0xff] %v3927_v35  ;;  %v3940_v27 = vadd.f32 %v1295_v60, %v3879_v6  ;;  %v1501_v35 = vpop.xlane.xlu0 %1500 }
 0x350   : > { %v3905_v11 = vpop.eup %2865  ;;  %1786 = vadd.xlane.f32.xlu2 %v3903_v28 }
 0x351   : > { %1784 = vadd.xlane.f32.xlu0 %v3905_v11 }
 0x352   : > { %1508 = vmax.xlane.f32.xlu1 %v3908_v18 }
 0x355   : > { %v3920_v9 = vpop.xlane.xlu1 %1436 }
 0x356   : > { %v3936_v29 = vpop.xlane.xlu2 %1434 }
 0x35a   : > { %1448 = vmax.xlane.f32.xlu1 %v3924_v61 }
 0x35d   : > { %v3929_v54 = vpop.xlane.xlu1 %1528 }
 0x35e   : > { %4726 = vst [vmem:[#allocation43_spill] sm:$0xff] %v3929_v54  ;;  %v3948_v36 = vpop.xlane.xlu2 %1498 }
 0x35f   : > { %4727 = vst [vmem:[#allocation44_spill] sm:$0xff] %v3948_v36 }
 0x362   : > { %1478 = vmax.xlane.f32.xlu1 %v3933_v4 }
 0x365   : > { %v1439_v62 = vpop.xlane.xlu1 %1438 }
 0x366   : > { %v1559_v16 = vsub.f32 %v3777_v59, %v1439_v62  ;;  %v3953_v59 = vadd.f32 %v3781_v13, %v3946_v26  ;;  %v3960_v36 = vpop.xlane.xlu2 %1502 }
 0x368   : > { %v1630_v48 = vmul.f32 1.442695, %v1559_v16 }
 0x36a   : > { %1510 = vmax.xlane.f32.xlu1 %v3940_v27  ;;  %2867 = vpow2.f32 %v1630_v48  ;;  %v1590_v48 = vsub.f32 %v3715_v55, %v1501_v35  ;;  %v3969_v55 = vpop.xlane.xlu0 %1530 }
 0x36b   : > { %4730 = vst [vmem:[#allocation47_spill] sm:$0xff] %v3969_v55 }
 0x36c   : > { %v1692_v60 = vmul.f32 1.442695, %v1590_v48 }
 0x36d   : > { %v1469_v49 = vpop.xlane.xlu1 %1468 }
 0x36e   : > { %v1574_v34 = vsub.f32 %v3793_v53, %v1469_v49  ;;  %v3979_v48 = vpop.xlane.xlu2 %1504 }
 0x370   : > { %v1660_v62 = vmul.f32 1.442695, %v1574_v34  ;;  %v3955_v16 = vpop.eup %2867  ;;  %v3967_v34 = vadd.f32 %v3761_v31, %v3918_v40 }
 0x371   : > { %4728 = vst [vmem:[#allocation45_spill] sm:$0xff] %v3955_v16  ;;  %1758 = vadd.xlane.f32.xlu0 %v3955_v16 }
 0x372   : > { %2869 = vpow2.f32 %v1660_v62  ;;  %1450 = vmax.xlane.f32.xlu1 %v3953_v59 }
 0x373   : > { %2871 = vpow2.f32 %v1692_v60  ;;  %v3987_v60 = vpop.xlane.xlu0 %1534 }
 0x375   : > { %v1441_v54 = vpop.xlane.xlu1 %1440 }
 0x376   : > { %v1560_v49 = vsub.f32 %v3809_v23, %v1441_v54  ;;  %v1298_v23 = vpop.f32.mrf.mxu0  ;;  %v3993_v55 = vpop.xlane.xlu2 %1538 }
 0x377   : > { %v3982_v31 = vadd.f32 %v1298_v23, %v3918_v40 }
 0x378   : > { %v3963_v53 = vpop.eup %2869  ;;  %v1632_v13 = vmul.f32 1.442695, %v1560_v49  ;;  %v1411_v49 = vpop.f32.mrf.mxu1 }
 0x379   : > { %4729 = vst [vmem:[#allocation46_spill] sm:$0xff] %v3963_v53  ;;  %1788 = vadd.xlane.f32.xlu2 %v3963_v53  ;;  %v3975_v62 = vpop.eup %2871  ;;  %v3991_v16 = vadd.f32 %v1411_v49, %v3879_v6 }
 0x37a   : > { %2873 = vpow2.f32 %v1632_v13  ;;  %1480 = vmax.xlane.f32.xlu1 %v3967_v34  ;;  %4731 = vst [vmem:[#allocation48_spill] sm:$0xff] %v3975_v62 }
 0x37b   : > { %v1537_v23 = vpop.xlane.xlu0 %1536 }
 0x37c   : > { %v1608_v6 = vsub.f32 %v3770_v44, %v1537_v23 }
 0x37d   : > { %v3973_v35 = vpop.xlane.xlu1 %1470 }
 0x380   : > { %v3977_v54 = vpop.eup %2873  ;;  %v1414_v7 = vpop.f32.mrf.mxu1 }
 0x381   : > { %1820 = vadd.xlane.f32.xlu2 %v3975_v62  ;;  %1760 = vadd.xlane.f32.xlu0 %v3977_v54 }
 0x382   : > { %1512 = vmax.xlane.f32.xlu1 %v3982_v31 }
 0x385   : > { %v1533_v13 = vpop.xlane.xlu1 %1532 }
 0x386   : > { %v1606_v53 = vsub.f32 %v3829_v25, %v1533_v13 }
 0x388   : > { %v1724_v21 = vmul.f32 1.442695, %v1606_v53  ;;  %v4008_v53 = vpop.xlane.xlu0 %1484 }
 0x38a   : > { %2875 = vpow2.f32 %v1724_v21  ;;  %1542 = vmax.xlane.f32.xlu1 %v3991_v16  ;;  %v4006_v21 = vpop.xlane.xlu2 %1540 }
 0x38d   : > { %v1443_v62 = vpop.xlane.xlu1 %1442 }
 0x38e   : > { %v1561_v10 = vsub.f32 %v3838_v42, %v1443_v62  ;;  %v1728_v42 = vmul.f32 1.442695, %v1608_v6 }
 0x390   : > { %v3997_v8 = vpop.eup %2875  ;;  %v1634_v25 = vmul.f32 1.442695, %v1561_v10  ;;  %v1300_v10 = vpop.f32.mrf.mxu0 }
 0x391   : > { %4732 = vst [vmem:[#allocation49_spill] sm:$0xff] %v3997_v8  ;;  %1852 = vadd.xlane.f32.xlu0 %v3997_v8  ;;  %v4026_v8 = vadd.f32 %v1300_v10, %v3946_v26 }
 0x392   : > { %2877 = vpow2.f32 %v1634_v25  ;;  %1452 = vmax.xlane.f32.xlu1 %v4001_v37  ;;  %v4020_v44 = vpop.xlane.xlu2 %1454 }
 0x393   : > { %2879 = vpow2.f32 %v1728_v42 }
 0x395   : > { %v4010_v49 = vpop.xlane.xlu1 %1472 }
 0x398   : > { %v4012_v62 = vpop.eup %2877  ;;  %v1303_v17 = vpop.f32.mrf.mxu0 }
 0x399   : > { %1762 = vadd.xlane.f32.xlu2 %v4012_v62  ;;  %v4023_v6 = vpop.eup %2879 }
 0x39a   : > { %1482 = vmax.xlane.f32.xlu1 %v4016_v51  ;;  %4733 = vst [vmem:[#allocation50_spill] sm:$0xff] %v4023_v6 }
 0x39c   : > { %v1749_v13 = vpop.xlane.xlu0 %1748 }
 0x39d   : > { %v1445_v23 = vpop.xlane.xlu1 %1444  ;;  %2881 = vrcp.f32 %v1749_v13  ;;  %v4034_v13 = vadd.f32 %v1414_v7, %v3918_v40  ;;  %v4044_v7 = vadd.f32 %v1303_v17, %v3789_v1 }
 0x39e   : > { %v1562_v25 = vsub.f32 %v3850_v41, %v1445_v23 }
 0x3a0   : > { %v1636_v22 = vmul.f32 1.442695, %v1562_v25 }
 0x3a1   : > { %1856 = vadd.xlane.f32.xlu2 %v4023_v6 }
 0x3a2   : > { %2883 = vpow2.f32 %v1636_v22  ;;  %1514 = vmax.xlane.f32.xlu1 %v4026_v8 }
 0x3a3   : > { %v1751_v42 = vpop.xlane.xlu2 %1750  ;;  %v2882_v46 = vpop.eup %2881 }
 0x3a4   : > { %2885 = vrcp.f32 %v1751_v42  ;;  %v1938_v23 = vmul.f32 %v2882_v46, %v3852_v24 }
 0x3a5   : > { %v1475_v56 = vpop.xlane.xlu1 %1474 }
 0x3a6   : > { %v1577_v38 = vsub.f32 %v3706_v32, %v1475_v56  ;;  %v2006_v42 = vpack.c.bf16 %v1938_v23, %v1938_v23 }
 0x3a8   : > { %v4031_v41 = vpop.eup %2883  ;;  %v1666_v10 = vmul.f32 1.442695, %v1577_v38  ;;  %v4046_v24 = vunpack.c.l.b16 %v2006_v42 }
 0x3a9   : > { %1764 = vadd.xlane.f32.xlu0 %v4031_v41 }
 0x3aa   : > { %2887 = vpow2.f32 %v1666_v10  ;;  %1544 = vmax.xlane.f32.xlu1 %v4034_v13  ;;  %v2886_v25 = vpop.eup %2885  ;;  %4735 = vst [vmem:[#allocation52_spill] sm:$0xff] %v4046_v24 }
 0x3ab   : > { %v1939_v22 = vmul.f32 %v2886_v25, %v3859_v45  ;;  %v4062_v25 = vpop.xlane.xlu2 %1752 }
 0x3ac   : > { %4738 = vst [vmem:[#allocation55_spill] sm:$0xff] %v4062_v25 }
 0x3ad   : > { %v1507_v6 = vpop.xlane.xlu1 %1506  ;;  %v2007_v32 = vpack.c.bf16 %v1939_v22, %v1939_v22  ;;  %v1189_v22 = vpop.f32.mrf.mxu3 }
 0x3ae   : > { %v1593_v56 = vsub.f32 %v3870_v12, %v1507_v6  ;;  %v1416_v12 = vpop.f32.mrf.mxu1 }
 0x3af   : > { %v4048_v38 = vunpack.c.l.b16 %v2007_v32  ;;  %v4058_v17 = vadd.f32 %v1416_v12, %v3946_v26 }
 0x3b0   : > { %v4041_v5 = vpop.eup %2887  ;;  %v1698_v46 = vmul.f32 1.442695, %v1593_v56 }
 0x3b1   : > { %4734 = vst [vmem:[#allocation51_spill] sm:$0xff] %v4041_v5  ;;  %1794 = vadd.xlane.f32.xlu0 %v4041_v5 }
 0x3b2   : > { %4736 = vst [vmem:[#allocation53_spill] sm:$0xff] %v4048_v38  ;;  %2889 = vpow2.f32 %v1698_v46  ;;  %1516 = vmax.xlane.f32.xlu1 %v4044_v7  ;;  %v1305_v46 = vpop.f32.mrf.mxu0 }
 0x3b5   : > { %v1447_v40 = vpop.xlane.xlu1 %1446 }
 0x3b6   : > { %v1563_v6 = vsub.f32 %v3884_v57, %v1447_v40  ;;  %v4071_v57 = vadd.f32 %v1189_v22, %v3805_v43  ;;  %v1419_v22 = vpop.f32.mrf.mxu1 }
 0x3b8   : > { %v4055_v10 = vpop.eup %2889  ;;  %v1638_v23 = vmul.f32 1.442695, %v1563_v6 }
 0x3b9   : > { %4737 = vst [vmem:[#allocation54_spill] sm:$0xff] %v4055_v10  ;;  %1826 = vadd.xlane.f32.xlu0 %v4055_v10 }
 0x3ba   : > { %2891 = vpow2.f32 %v1638_v23  ;;  %1546 = vmax.xlane.f32.xlu1 %v4058_v17  ;;  %v4077_v23 = vadd.f32 %v1305_v46, %v3805_v43 }
 0x3bc   : > { %v4064_v42 = vpop.xlane.xlu0 %1782 }
 0x3bd   : > { %4739 = vst [vmem:[#allocation56_spill] sm:$0xff] %v4064_v42  ;;  %v4066_v56 = vpop.xlane.xlu1 %1476 }
 0x3c0   : > { %v4068_v32 = vpop.eup %2891 }
 0x3c1   : > { %1766 = vadd.xlane.f32.xlu2 %v4068_v32 }
 0x3c2   : > { %1486 = vmax.xlane.f32.xlu1 %v4071_v57 }
 0x3c3   : > { %v1787_v26 = vpop.xlane.xlu2 %1786 }
 0x3c4   : > { %2893 = vrcp.f32 %v1787_v26  ;;  %v1785_v12 = vpop.xlane.xlu0 %1784 }
 0x3c5   : > { %v1509_v40 = vpop.xlane.xlu1 %1508  ;;  %2895 = vrcp.f32 %v1785_v12 }
 0x3c6   : > { %v1594_v6 = vsub.f32 %v3908_v18, %v1509_v40  ;;  %v4088_v40 = vadd.f32 %v1419_v22, %v3789_v1 }
 0x3c8   : > { %v1700_v45 = vmul.f32 1.442695, %v1594_v6 }
 0x3ca   : > { %v2894_v24 = vpop.eup %2893  ;;  %2897 = vpow2.f32 %v1700_v45  ;;  %1518 = vmax.xlane.f32.xlu1 %v4077_v23 }
 0x3cb   : > { %v1957_v38 = vmul.f32 %v2894_v24, %v3903_v28  ;;  %v2896_v10 = vpop.eup %2895  ;;  %v1570_v28 = vsub.f32 %v3595_v30, %v3911_v19  ;;  %v1557_v30 = vsub.f32 %v3635_v39, %v3936_v29 }
 0x3cc   : > { %v1956_v26 = vmul.f32 %v2896_v10, %v3905_v11  ;;  %v1421_v11 = vpop.f32.mrf.mxu1 }
 0x3cd   : > { %v1449_v5 = vpop.xlane.xlu1 %1448  ;;  %v2025_v25 = vpack.c.bf16 %v1957_v38, %v1957_v38  ;;  %v1652_v1 = vmul.f32 1.442695, %v1570_v28  ;;  %v4102_v10 = vadd.f32 %v1421_v11, %v3805_v43  ;;  %v1558_v43 = vsub.f32 %v3738_v33, %v3920_v9 }
 0x3ce   : > { %v1564_v12 = vsub.f32 %v3924_v61, %v1449_v5  ;;  %v2024_v42 = vpack.c.bf16 %v1956_v26, %v1956_v26  ;;  %v1575_v28 = vsub.f32 %v3822_v58, %v3973_v35 }
 0x3cf   : > { %v4083_v18 = vunpack.c.l.b16 %v2025_v25  ;;  %v1628_v39 = vmul.f32 1.442695, %v1558_v43 }
 0x3d0   : > { %v4085_v46 = vpop.eup %2897  ;;  %v1640_v45 = vmul.f32 1.442695, %v1564_v12  ;;  %v4091_v6 = vunpack.c.l.b16 %v2024_v42 }
 0x3d1   : > { %1828 = vadd.xlane.f32.xlu0 %v4085_v46 }
 0x3d2   : > { %2899 = vpow2.f32 %v1640_v45  ;;  %1548 = vmax.xlane.f32.xlu1 %v4088_v40 }
 0x3d5   : > { %v1479_v61 = vpop.xlane.xlu1 %1478 }
 0x3d6   : > { %v1579_v24 = vsub.f32 %v3933_v4, %v1479_v61  ;;  %v1626_v4 = vmul.f32 1.442695, %v1557_v30 }
 0x3d8   : > { %v4099_v38 = vpop.eup %2899  ;;  %v1670_v25 = vmul.f32 1.442695, %v1579_v24  ;;  %v1662_v24 = vmul.f32 1.442695, %v1575_v28 }
 0x3d9   : > { %1768 = vadd.xlane.f32.xlu2 %v4099_v38 }
 0x3da   : > { %2901 = vpow2.f32 %v1670_v25  ;;  %1550 = vmax.xlane.f32.xlu1 %v4102_v10 }
 0x3db   : > { %2903 = vpow2.f32 %v1652_v1  ;;  %v1591_v1 = vsub.f32 %v3718_v52, %v3960_v36  ;;  %v1576_v36 = vsub.f32 %v3679_v20, %v4010_v49 }
 0x3dd   : > { %v1511_v19 = vpop.xlane.xlu1 %1510 }
 0x3de   : > { %v1595_v42 = vsub.f32 %v3940_v27, %v1511_v19  ;;  %v1694_v19 = vmul.f32 1.442695, %v1591_v1 }
 0x3e0   : > { %v4109_v22 = vpop.eup %2901  ;;  %v1702_v26 = vmul.f32 1.442695, %v1595_v42 }
 0x3e1   : > { %v4111_v12 = vpop.eup %2903  ;;  %1798 = vadd.xlane.f32.xlu0 %v4109_v22 }
 0x3e2   : > { %2905 = vpow2.f32 %v1702_v26  ;;  %1780 = vadd.xlane.f32.xlu1 %v4111_v12  ;;  %v1664_v26 = vmul.f32 1.442695, %v1576_v36 }
 0x3e3   : > { %2907 = vpow2.f32 %v1626_v4 }
 0x3e4   : > { %2909 = vpow2.f32 %v1628_v39  ;;  %v4144_v52 = vpop.xlane.xlu0 %1758 }
 0x3e5   : > { %v4117_v45 = vpop.xlane.xlu1 %1450 }
 0x3e8   : > { %v4119_v29 = vpop.eup %2905 }
 0x3e9   : > { %v4121_v27 = vpop.eup %2907  ;;  %1830 = vadd.xlane.f32.xlu2 %v4119_v29 }
 0x3ea   : > { %1754 = vadd.xlane.f32.xlu1 %v4121_v27  ;;  %v4128_v9 = vpop.eup %2909 }
 0x3ed   : > { %v1481_v11 = vpop.xlane.xlu1 %1480 }
 0x3ee   : > { %v1580_v61 = vsub.f32 %v3967_v34, %v1481_v11  ;;  %v4139_v34 = vpop.xlane.xlu2 %1788  ;;  %v1592_v11 = vsub.f32 %v3734_v2, %v3979_v48  ;;  %v1578_v2 = vsub.f32 %v3893_v0, %v4066_v56  ;;  %v1609_v56 = vsub.f32 %v3751_v63, %v3993_v55  ;;  %v4765_v63 = vld [vmem:[#allocation23_spill] sm:$0xff] }
 0x3ef   : > { %v1610_v55 = vsub.f32 %v3773_v47, %v4006_v21 }
 0x3f0   : > { %v1672_v33 = vmul.f32 1.442695, %v1580_v61 }
 0x3f2   : > { %2911 = vpow2.f32 %v1672_v33  ;;  %1756 = vadd.xlane.f32.xlu1 %v4128_v9 }
 0x3f3   : > { %2913 = vpow2.f32 %v1662_v24  ;;  %v1696_v24 = vmul.f32 1.442695, %v1592_v11 }
 0x3f4   : > { %v1761_v49 = vpop.xlane.xlu0 %1760 }
 0x3f5   : > { %v1513_v25 = vpop.xlane.xlu1 %1512 }
 0x3f6   : > { %v1596_v30 = vsub.f32 %v3982_v31, %v1513_v25  ;;  %v4155_v20 = vpop.xlane.xlu2 %1820 }
 0x3f8   : > { %v4134_v42 = vpop.eup %2911  ;;  %v1704_v58 = vmul.f32 1.442695, %v1596_v30 }
 0x3f9   : > { %v4136_v35 = vpop.eup %2913  ;;  %1800 = vadd.xlane.f32.xlu0 %v4134_v42 }
 0x3fa   : > { %2915 = vpow2.f32 %v1704_v58  ;;  %1790 = vadd.xlane.f32.xlu1 %v4136_v35  ;;  %v1668_v58 = vmul.f32 1.442695, %v1578_v2 }
 0x3fb   : > { %2917 = vpow2.f32 %v1694_v19 }
 0x3fd   : > { %v1543_v31 = vpop.xlane.xlu1 %1542 }
 0x3fe   : > { %v1611_v4 = vsub.f32 %v3991_v16, %v1543_v31 }
 0x400   : > { %v4147_v43 = vpop.eup %2915  ;;  %v1734_v39 = vmul.f32 1.442695, %v1611_v4 }
 0x401   : > { %v4149_v28 = vpop.eup %2917  ;;  %1832 = vadd.xlane.f32.xlu2 %v4147_v43 }
 0x402   : > { %2919 = vpow2.f32 %v1734_v39  ;;  %1822 = vadd.xlane.f32.xlu1 %v4149_v28 }
 0x403   : > { %2921 = vpow2.f32 %v1664_v26 }
 0x404   : > { %2923 = vrcp.f32 %v1761_v49 }
 0x405   : > { %v1453_v61 = vpop.xlane.xlu1 %1452 }
 0x406   : > { %v1566_v16 = vsub.f32 %v4001_v37, %v1453_v61  ;;  %v1730_v61 = vmul.f32 1.442695, %v1609_v56 }
 0x408   : > { %v4158_v33 = vpop.eup %2919  ;;  %v1644_v1 = vmul.f32 1.442695, %v1566_v16 }
 0x409   : > { %v4160_v25 = vpop.eup %2921  ;;  %1862 = vadd.xlane.f32.xlu0 %v4158_v33 }
 0x40a   : > { %2925 = vpow2.f32 %v1644_v1  ;;  %1792 = vadd.xlane.f32.xlu1 %v4160_v25  ;;  %v2924_v30 = vpop.eup %2923 }
 0x40b   : > { %2927 = vpow2.f32 %v1696_v24  ;;  %v1944_v4 = vmul.f32 %v2924_v30, %v3977_v54 }
 0x40c   : > { %v1763_v48 = vpop.xlane.xlu2 %1762 }
 0x40d   : > { %2929 = vrcp.f32 %v1763_v48  ;;  %v1483_v37 = vpop.xlane.xlu1 %1482  ;;  %v2012_v39 = vpack.c.bf16 %v1944_v4, %v1944_v4  ;;  %v1732_v48 = vmul.f32 1.442695, %v1610_v55 }
 0x40e   : > { %v1581_v19 = vsub.f32 %v4016_v51, %v1483_v37 }
 0x40f   : > { %v4179_v54 = vunpack.c.l.b16 %v2012_v39 }
 0x410   : > { %v4167_v36 = vpop.eup %2925  ;;  %v1674_v31 = vmul.f32 1.442695, %v1581_v19  ;;  %v1582_v19 = vsub.f32 %v3799_v50, %v4008_v53  ;;  %v1553_v50 = vsub.f32 %v3579_v14, %v3832_v3 }
 0x411   : > { %v4170_v26 = vpop.eup %2927  ;;  %1772 = vadd.xlane.f32.xlu2 %v4167_v36 }
 0x412   : > { %2931 = vpow2.f32 %v1674_v31  ;;  %1824 = vadd.xlane.f32.xlu1 %v4170_v26  ;;  %v4199_v31 = vpop.xlane.xlu0 %1852  ;;  %v1676_v47 = vmul.f32 1.442695, %v1582_v19 }
 0x413   : > { %v2930_v0 = vpop.eup %2929  ;;  %2933 = vpow2.f32 %v1668_v58  ;;  %v1565_v58 = vsub.f32 %v3953_v59, %v4117_v45  ;;  %4740 = vst [vmem:[#allocation57_spill] sm:$0xff] %v4199_v31  ;;  %v1618_v45 = vmul.f32 1.442695, %v1553_v50 }
 0x414   : > { %v1945_v51 = vmul.f32 %v2930_v0, %v4012_v62  ;;  %2935 = vpow2.f32 %v1730_v61  ;;  %v4211_v53 = vpop.xlane.xlu2 %1856 }
 0x415   : > { %v1515_v11 = vpop.xlane.xlu1 %1514  ;;  %v1642_v4 = vmul.f32 1.442695, %v1565_v58 }
 0x416   : > { %v2013_v49 = vpack.c.bf16 %v1945_v51, %v1945_v51  ;;  %v1597_v59 = vsub.f32 %v4026_v8, %v1515_v11  ;;  %v1567_v8 = vsub.f32 %v3813_v15, %v4020_v44  ;;  %v4743_v15 = vld [vmem:[#allocation26_spill] sm:$0xff] }
 0x417   : > { %v1607_v44 = vsub.f32 %v4743_v15, %v3987_v60 }
 0x418   : > { %v4177_v16 = vpop.eup %2931  ;;  %v4181_v24 = vunpack.c.l.b16 %v2013_v49  ;;  %v1706_v55 = vmul.f32 1.442695, %v1597_v59  ;;  %v1646_v19 = vmul.f32 1.442695, %v1567_v8 }
 0x419   : > { %v4183_v1 = vpop.eup %2933  ;;  %1802 = vadd.xlane.f32.xlu2 %v4177_v16 }
 0x41a   : > { %1796 = vadd.xlane.f32.xlu1 %v4183_v1  ;;  %v4192_v37 = vpop.eup %2935 }
 0x41d   : > { %v1545_v62 = vpop.xlane.xlu1 %1544 }
 0x41e   : > { %v1612_v2 = vsub.f32 %v4034_v13, %v1545_v62 }
 0x420   : > { %v1736_v30 = vmul.f32 1.442695, %v1612_v2 }
 0x422   : > { %2937 = vpow2.f32 %v1736_v30  ;;  %1858 = vadd.xlane.f32.xlu1 %v4192_v37 }
 0x423   : > { %2939 = vpow2.f32 %v1732_v48 }
 0x424   : > { %2941 = vpow2.f32 %v1676_v47 }
 0x425   : > { %v1517_v21 = vpop.xlane.xlu1 %1516 }
 0x426   : > { %v1598_v13 = vsub.f32 %v4044_v7, %v1517_v21  ;;  %v1765_v7 = vpop.xlane.xlu0 %1764 }
 0x428   : > { %v4202_v0 = vpop.eup %2937  ;;  %v1708_v56 = vmul.f32 1.442695, %v1598_v13 }
 0x429   : > { %v4204_v51 = vpop.eup %2939  ;;  %1864 = vadd.xlane.f32.xlu0 %v4202_v0 }
 0x42a   : > { %2943 = vpow2.f32 %v1708_v56  ;;  %1860 = vadd.xlane.f32.xlu1 %v4204_v51  ;;  %v4214_v61 = vpop.eup %2941  ;;  %v4745_v56 = vld [vmem:[#allocation10_spill] sm:$0xff] }
 0x42b   : > { %2945 = vpow2.f32 %v1642_v4  ;;  %v4744_v4 = vld [vmem:[#allocation29_spill] sm:$0xff] }
 0x42c   : > { %2947 = vrcp.f32 %v1765_v7  ;;  %v1552_v50 = vsub.f32 %v4745_v56, %v4744_v4  ;;  %v4749_v56 = vld [vmem:[#allocation32_spill] sm:$0xff] }
 0x42d   : > { %v1547_v39 = vpop.xlane.xlu1 %1546  ;;  %2949 = vpow2.f32 %v1618_v45  ;;  %v1726_v45 = vmul.f32 1.442695, %v1607_v44  ;;  %v4747_v44 = vld [vmem:[#allocation37_spill] sm:$0xff] }
 0x42e   : > { %v1613_v49 = vsub.f32 %v4058_v17, %v1547_v39 }
 0x430   : > { %v4216_v14 = vpop.eup %2943  ;;  %v1738_v3 = vmul.f32 1.442695, %v1613_v49  ;;  %v1616_v49 = vmul.f32 1.442695, %v1552_v50  ;;  %v4750_v50 = vld [vmem:[#allocation18_spill] sm:$0xff] }
 0x431   : > { %4741 = vst [vmem:[#allocation58_spill] sm:$0xff] %v4216_v14  ;;  %v4218_v62 = vpop.eup %2945  ;;  %1804 = vadd.xlane.f32.xlu0 %v4214_v61  ;;  %1836 = vadd.xlane.f32.xlu2 %v4216_v14 }
 0x432   : > { %2951 = vpow2.f32 %v1738_v3  ;;  %1770 = vadd.xlane.f32.xlu1 %v4218_v62  ;;  %v2948_v11 = vpop.eup %2947 }
 0x433   : > { %2953 = vpow2.f32 %v1706_v55  ;;  %v4226_v30 = vpop.eup %2949  ;;  %v1946_v21 = vmul.f32 %v2948_v11, %v4031_v41 }
 0x434   : > { %v1767_v17 = vpop.xlane.xlu2 %1766  ;;  %4742 = vst [vmem:[#allocation59_spill] sm:$0xff] %v4226_v30 }
 0x435   : > { %2955 = vrcp.f32 %v1767_v17  ;;  %v1487_v2 = vpop.xlane.xlu1 %1486  ;;  %v2014_v41 = vpack.c.bf16 %v1946_v21, %v1946_v21  ;;  %v4250_v17 = vpop.xlane.xlu0 %1794 }
 0x436   : > { %v1583_v48 = vsub.f32 %v4071_v57, %v1487_v2 }
 0x437   : > { %v4243_v3 = vunpack.c.l.b16 %v2014_v41 }
 0x438   : > { %v4228_v58 = vpop.eup %2951  ;;  %v1678_v47 = vmul.f32 1.442695, %v1583_v48 }
 0x439   : > { %v4231_v13 = vpop.eup %2953  ;;  %1746 = vadd.xlane.f32.xlu0 %v4226_v30  ;;  %1866 = vadd.xlane.f32.xlu2 %v4228_v58 }
 0x43a   : > { %2957 = vpow2.f32 %v1678_v47  ;;  %1834 = vadd.xlane.f32.xlu1 %v4231_v13 }
 0x43b   : > { %v2956_v57 = vpop.eup %2955  ;;  %2959 = vpow2.f32 %v1646_v19 }
 0x43c   : > { %v1947_v59 = vmul.f32 %v2956_v57, %v4068_v32  ;;  %2961 = vpow2.f32 %v1726_v45  ;;  %v4748_v57 = vld [vmem:[#allocation22_spill] sm:$0xff] }
 0x43d   : > { %v1519_v7 = vpop.xlane.xlu1 %1518  ;;  %2963 = vpow2.f32 %v1616_v49  ;;  %v1588_v4 = vsub.f32 %v4748_v57, %v4747_v44  ;;  %v4752_v49 = vld [vmem:[#allocation56_spill] sm:$0xff]  ;;  %v4756_v57 = vld [vmem:[#allocation25_spill] sm:$0xff] }
 0x43e   : > { %v2015_v39 = vpack.c.bf16 %v1947_v59, %v1947_v59  ;;  %v1599_v11 = vsub.f32 %v4077_v23, %v1519_v7  ;;  %v1569_v23 = vsub.f32 %v4750_v50, %v4749_v56  ;;  %v4267_v59 = vpop.xlane.xlu0 %1826  ;;  %v4758_v56 = vld [vmem:[#allocation27_spill] sm:$0xff] }
 0x440   : > { %v4241_v55 = vpop.eup %2957  ;;  %v4245_v60 = vunpack.c.l.b16 %v2015_v39  ;;  %v1710_v19 = vmul.f32 1.442695, %v1599_v11  ;;  %v1650_v45 = vmul.f32 1.442695, %v1569_v23 }
 0x441   : > { %v4247_v8 = vpop.eup %2959  ;;  %1806 = vadd.xlane.f32.xlu2 %v4241_v55 }
 0x442   : > { %1774 = vadd.xlane.f32.xlu1 %v4247_v8  ;;  %v4257_v47 = vpop.eup %2961 }
 0x443   : > { %4746 = vst [vmem:[#allocation26_spill] sm:$0xff] %v4257_v47  ;;  %v4259_v15 = vpop.eup %2963 }
 0x445   : > { %v1549_v2 = vpop.xlane.xlu1 %1548 }
 0x446   : > { %v1614_v48 = vsub.f32 %v4088_v40, %v1549_v2  ;;  %v1688_v40 = vmul.f32 1.442695, %v1588_v4  ;;  %v1829_v23 = vpop.xlane.xlu0 %1828 }
 0x448   : > { %v1740_v21 = vmul.f32 1.442695, %v1614_v48  ;;  %v4753_v48 = vld [vmem:[#allocation38_spill] sm:$0xff] }
 0x449   : > { %1854 = vadd.xlane.f32.xlu2 %v4257_v47 }
 0x44a   : > { %2965 = vpow2.f32 %v1740_v21  ;;  %1744 = vadd.xlane.f32.xlu1 %v4259_v15  ;;  %v4754_v21 = vld [vmem:[#allocation11_spill] sm:$0xff] }
 0x44b   : > { %2967 = vpow2.f32 %v1710_v19  ;;  %v1568_v44 = vsub.f32 %v4754_v21, %v4753_v48  ;;  %v4755_v19 = vld [vmem:[#allocation47_spill] sm:$0xff] }
 0x44c   : > { %2969 = vrcp.f32 %v4752_v49  ;;  %v1605_v4 = vsub.f32 %v4756_v57, %v4755_v19  ;;  %v4761_v57 = vld [vmem:[#allocation42_spill] sm:$0xff] }
 0x44d   : > { %v1551_v41 = vpop.xlane.xlu1 %1550  ;;  %2971 = vpow2.f32 %v1688_v40 }
 0x44e   : > { %v1615_v7 = vsub.f32 %v4102_v10, %v1551_v41  ;;  %v4757_v10 = vld [vmem:[#allocation43_spill] sm:$0xff]  ;;  %v4283_v41 = vpop.xlane.xlu2 %1768  ;;  %v1722_v48 = vmul.f32 1.442695, %v1605_v4 }
 0x44f   : > { %v1604_v50 = vsub.f32 %v4758_v56, %v4757_v10  ;;  %v4762_v10 = vld [vmem:[#allocation17_spill] sm:$0xff] }
 0x450   : > { %v4270_v39 = vpop.eup %2965  ;;  %v1742_v11 = vmul.f32 1.442695, %v1615_v7  ;;  %v1648_v7 = vmul.f32 1.442695, %v1568_v44  ;;  %v1602_v56 = vsub.f32 %v4762_v10, %v4761_v57  ;;  %v4763_v44 = vld [vmem:[#allocation40_spill] sm:$0xff] }
 0x451   : > { %4751 = vst [vmem:[#allocation29_spill] sm:$0xff] %v4270_v39  ;;  %v4273_v2 = vpop.eup %2967  ;;  %1868 = vadd.xlane.f32.xlu0 %v4270_v39  ;;  %v1720_v21 = vmul.f32 1.442695, %v1604_v50 }
 0x452   : > { %2973 = vpow2.f32 %v1742_v11  ;;  %1838 = vadd.xlane.f32.xlu1 %v4273_v2  ;;  %v2970_v5 = vpop.eup %2969  ;;  %v4760_v11 = vld [vmem:[#allocation55_spill] sm:$0xff]  ;;  %v1716_v57 = vmul.f32 1.442695, %v1602_v56 }
 0x453   : > { %2975 = vpow2.f32 %v1650_v45  ;;  %v4285_v40 = vpop.eup %2971  ;;  %v1955_v4 = vmul.f32 %v2970_v5, %v4763_v44 }
 0x454   : > { %4759 = vst [vmem:[#allocation10_spill] sm:$0xff] %v4285_v40 }
 0x455   : > { %v1781_v49 = vpop.xlane.xlu1 %1780  ;;  %v2023_v14 = vpack.c.bf16 %v1955_v4, %v1955_v4 }
 0x456   : > { %2977 = vrcp.f32 %v1781_v49  ;;  %v4764_v49 = vld [vmem:[#allocation44_spill] sm:$0xff] }
 0x457   : > { %2979 = vrcp.f32 %v1829_v23  ;;  %v1589_v50 = vsub.f32 %v4765_v63, %v4764_v49  ;;  %v4766_v23 = vld [vmem:[#allocation34_spill] sm:$0xff] }
 0x458   : > { %v4287_v19 = vpop.eup %2973  ;;  %2981 = vrcp.f32 %v4760_v11  ;;  %v4767_v11 = vld [vmem:[#allocation20_spill] sm:$0xff] }
 0x459   : > { %v4290_v45 = vpop.eup %2975  ;;  %2983 = vpow2.f32 %v1648_v7  ;;  %1816 = vadd.xlane.f32.xlu0 %v4285_v40  ;;  %1870 = vadd.xlane.f32.xlu2 %v4287_v19  ;;  %v1587_v32 = vsub.f32 %v4767_v11, %v4766_v23  ;;  %v1690_v44 = vmul.f32 1.442695, %v1589_v50  ;;  %v4769_v23 = vld [vmem:[#allocation31_spill] sm:$0xff]  ;;  %v4773_v50 = vld [vmem:[#allocation33_spill] sm:$0xff] }
 0x45a   : > { %2985 = vpow2.f32 %v1722_v48  ;;  %1778 = vadd.xlane.f32.xlu1 %v4290_v45 }
 0x45b   : > { %2987 = vpow2.f32 %v1720_v21  ;;  %v1686_v48 = vmul.f32 1.442695, %v1587_v32  ;;  %v4770_v21 = vld [vmem:[#allocation16_spill] sm:$0xff] }
 0x45c   : > { %v2978_v7 = vpop.eup %2977  ;;  %v1831_v47 = vpop.xlane.xlu2 %1830  ;;  %v1585_v11 = vsub.f32 %v4770_v21, %v4769_v23 }
 0x45d   : > { %v2980_v31 = vpop.eup %2979  ;;  %2989 = vrcp.f32 %v1831_v47  ;;  %v1755_v10 = vpop.xlane.xlu1 %1754  ;;  %v1954_v40 = vmul.f32 %v2978_v7, %v4111_v12  ;;  %v4772_v12 = vld [vmem:[#allocation36_spill] sm:$0xff]  ;;  %v4774_v7 = vld [vmem:[#allocation19_spill] sm:$0xff] }
 0x45e   : > { %v2982_v5 = vpop.eup %2981  ;;  %2991 = vrcp.f32 %v1755_v10  ;;  %v1978_v47 = vmul.f32 %v2980_v31, %v4085_v46  ;;  %v1586_v10 = vsub.f32 %v4774_v7, %v4773_v50  ;;  %v4776_v31 = vld [vmem:[#allocation14_spill] sm:$0xff] }
 0x45f   : > { %v4303_v63 = vpop.eup %2983  ;;  %v2022_v49 = vpack.c.bf16 %v1954_v40, %v1954_v40  ;;  %2993 = vrcp.f32 %v4144_v52  ;;  %v1940_v4 = vmul.f32 %v2982_v5, %v4772_v12  ;;  %v4318_v40 = vunpack.c.l.b16 %v2023_v14  ;;  %v4775_v52 = vld [vmem:[#allocation30_spill] sm:$0xff] }
 0x460   : > { %v4305_v30 = vpop.eup %2985  ;;  %2995 = vpow2.f32 %v1716_v57  ;;  %v1584_v57 = vsub.f32 %v4776_v31, %v4775_v52  ;;  %v1682_v14 = vmul.f32 1.442695, %v1585_v11  ;;  %v1684_v7 = vmul.f32 1.442695, %v1586_v10  ;;  %v4781_v10 = vld [vmem:[#allocation41_spill] sm:$0xff] }
 0x461   : > { %4768 = vst [vmem:[#allocation37_spill] sm:$0xff] %v4305_v30  ;;  %v4311_v56 = vpop.eup %2987  ;;  %1850 = vadd.xlane.f32.xlu0 %v4305_v30  ;;  %1776 = vadd.xlane.f32.xlu2 %v4303_v63  ;;  %v4316_v32 = vunpack.c.l.b16 %v2022_v49  ;;  %2997 = vpow2.f32 %v1690_v44  ;;  %v2046_v49 = vpack.c.bf16 %v1978_v47, %v1978_v47  ;;  %v2008_v50 = vpack.c.bf16 %v1940_v4, %v1940_v4 }
 0x462   : > { %4771 = vst [vmem:[#allocation22_spill] sm:$0xff] %v4311_v56  ;;  %1848 = vadd.xlane.f32.xlu1 %v4311_v56  ;;  %2999 = vpow2.f32 %v1686_v48  ;;  %v1680_v52 = vmul.f32 1.442695, %v1584_v57  ;;  %v4783_v57 = vld [vmem:[#allocation35_spill] sm:$0xff] }
 0x463   : > { %v2990_v46 = vpop.eup %2989  ;;  %v4334_v23 = vunpack.c.l.b16 %v2046_v49  ;;  %v4343_v4 = vunpack.c.l.b16 %v2008_v50 }
 0x464   : > { %v2992_v21 = vpop.eup %2991  ;;  %v1979_v5 = vmul.f32 %v2990_v46, %v4119_v29 }
 0x465   : > { %v1757_v12 = vpop.xlane.xlu1 %1756  ;;  %v1941_v30 = vmul.f32 %v2992_v21, %v4121_v27  ;;  %v2994_v44 = vpop.eup %2993  ;;  %v4780_v27 = vld [vmem:[#allocation45_spill] sm:$0xff] }
 0x466   : > { %3001 = vrcp.f32 %v1757_v12  ;;  %v2047_v56 = vpack.c.bf16 %v1979_v5, %v1979_v5  ;;  %v4329_v39 = vpop.eup %2995  ;;  %v1943_v47 = vmul.f32 %v2994_v44, %v4780_v27  ;;  %v4784_v21 = vld [vmem:[#allocation21_spill] sm:$0xff] }
 0x467   : > { %4777 = vst [vmem:[#allocation32_spill] sm:$0xff] %v4329_v39  ;;  %v2009_v48 = vpack.c.bf16 %v1941_v30, %v1941_v30  ;;  %v4331_v31 = vpop.eup %2997  ;;  %3003 = vrcp.f32 %v4139_v34  ;;  %v4782_v34 = vld [vmem:[#allocation24_spill] sm:$0xff]  ;;  %v1601_v5 = vsub.f32 %v4784_v21, %v4783_v57  ;;  %v4788_v57 = vld [vmem:[#allocation46_spill] sm:$0xff]  ;;  %v4789_v21 = vld [vmem:[#allocation39_spill] sm:$0xff] }
 0x468   : > { %4778 = vst [vmem:[#allocation18_spill] sm:$0xff] %v4331_v31  ;;  %v4336_v29 = vunpack.c.l.b16 %v2047_v56  ;;  %v4338_v11 = vpop.eup %2999  ;;  %3005 = vpow2.f32 %v1682_v14  ;;  %v1603_v46 = vsub.f32 %v4782_v34, %v4781_v10  ;;  %v2011_v44 = vpack.c.bf16 %v1943_v47, %v1943_v47 }
 0x469   : > { %4779 = vst [vmem:[#allocation56_spill] sm:$0xff] %v4338_v11  ;;  %1844 = vadd.xlane.f32.xlu0 %v4329_v39  ;;  %1818 = vadd.xlane.f32.xlu2 %v4331_v31  ;;  %v4345_v30 = vunpack.c.l.b16 %v2009_v48  ;;  %3007 = vpow2.f32 %v1684_v7  ;;  %v1714_v10 = vmul.f32 1.442695, %v1601_v5 }
 0x46a   : > { %1814 = vadd.xlane.f32.xlu1 %v4338_v11  ;;  %3009 = vpow2.f32 %v1680_v52  ;;  %v1718_v48 = vmul.f32 1.442695, %v1603_v46  ;;  %v4369_v46 = vunpack.c.l.b16 %v2011_v44 }
 0x46c   : > { %v3002_v14 = vpop.eup %3001 }
 0x46d   : > { %v1791_v12 = vpop.xlane.xlu1 %1790  ;;  %v1942_v50 = vmul.f32 %v3002_v14, %v4128_v9  ;;  %v3004_v7 = vpop.eup %3003  ;;  %v4790_v14 = vld [vmem:[#allocation15_spill] sm:$0xff] }
 0x46e   : > { %3011 = vrcp.f32 %v1791_v12  ;;  %v4357_v27 = vpop.eup %3005  ;;  %v1958_v9 = vmul.f32 %v3004_v7, %v4788_v57  ;;  %v1600_v5 = vsub.f32 %v4790_v14, %v4789_v21  ;;  %v4793_v14 = vld [vmem:[#allocation48_spill] sm:$0xff] }
 0x46f   : > { %4785 = vst [vmem:[#allocation38_spill] sm:$0xff] %v4357_v27  ;;  %v2010_v34 = vpack.c.bf16 %v1942_v50, %v1942_v50  ;;  %v4359_v56 = vpop.eup %3007  ;;  %3013 = vrcp.f32 %v4155_v20 }
 0x470   : > { %4786 = vst [vmem:[#allocation11_spill] sm:$0xff] %v4359_v56  ;;  %v4362_v52 = vpop.eup %3009  ;;  %3015 = vpow2.f32 %v1718_v48 }
 0x471   : > { %4787 = vst [vmem:[#allocation47_spill] sm:$0xff] %v4362_v52  ;;  %1810 = vadd.xlane.f32.xlu0 %v4357_v27  ;;  %1812 = vadd.xlane.f32.xlu2 %v4359_v56  ;;  %v4367_v47 = vunpack.c.l.b16 %v2010_v34  ;;  %3017 = vpow2.f32 %v1714_v10  ;;  %v2026_v27 = vpack.c.bf16 %v1958_v9, %v1958_v9  ;;  %v1712_v34 = vmul.f32 1.442695, %v1600_v5 }
 0x472   : > { %1808 = vadd.xlane.f32.xlu1 %v4362_v52 }
 0x473   : > { %v4383_v10 = vunpack.c.l.b16 %v2026_v27 }
 0x474   : > { %v3012_v12 = vpop.eup %3011  ;;  %v1833_v52 = vpop.xlane.xlu2 %1832 }
 0x475   : > { %v1823_v50 = vpop.xlane.xlu1 %1822  ;;  %v1959_v49 = vmul.f32 %v3012_v12, %v4136_v35  ;;  %v3014_v7 = vpop.eup %3013  ;;  %v4798_v35 = vld [vmem:[#allocation54_spill] sm:$0xff] }
 0x476   : > { %3019 = vrcp.f32 %v1823_v50  ;;  %v4377_v57 = vpop.eup %3015  ;;  %v1974_v20 = vmul.f32 %v3014_v7, %v4793_v14  ;;  %v4795_v7 = vld [vmem:[#allocation51_spill] sm:$0xff] }
 0x477   : > { %v2027_v44 = vpack.c.bf16 %v1959_v49, %v1959_v49  ;;  %4791 = vst [vmem:[#allocation25_spill] sm:$0xff] %v4377_v57  ;;  %3021 = vrcp.f32 %v4250_v17  ;;  %v4380_v48 = vpop.eup %3017 }
 0x478   : > { %4792 = vst [vmem:[#allocation43_spill] sm:$0xff] %v4380_v48  ;;  %3023 = vpow2.f32 %v1712_v34  ;;  %v2042_v5 = vpack.c.bf16 %v1974_v20, %v1974_v20  ;;  %v4403_v20 = vpop.xlane.xlu0 %1798 }
 0x479   : > { %1846 = vadd.xlane.f32.xlu2 %v4377_v57  ;;  %v4385_v21 = vunpack.c.l.b16 %v2027_v44 }
 0x47a   : > { %1842 = vadd.xlane.f32.xlu1 %v4380_v48  ;;  %v4397_v44 = vunpack.c.l.b16 %v2042_v5 }
 0x47c   : > { %v3020_v49 = vpop.eup %3019  ;;  %4796 = vst [vmem:[#allocation55_spill] sm:$0xff] %v4397_v44 }
 0x47d   : > { %v1793_v9 = vpop.xlane.xlu1 %1792  ;;  %v1975_v17 = vmul.f32 %v3020_v49, %v4149_v28  ;;  %v3022_v12 = vpop.eup %3021  ;;  %v3111_v49 = vld [vmem:[%s4636_s4 + $0x48] sm:$0xff] }
 0x47e   : > { %3025 = vrcp.f32 %v1793_v9  ;;  %v4392_v27 = vpop.eup %3023  ;;  %v1961_v34 = vmul.f32 %v3022_v12, %v4795_v7 }
 0x47f   : > { %v2043_v50 = vpack.c.bf16 %v1975_v17, %v1975_v17  ;;  %4794 = vst [vmem:[#allocation27_spill] sm:$0xff] %v4392_v27  ;;  %3027 = vrcp.f32 %v4267_v59 }
 0x480   : > { %v2029_v17 = vpack.c.bf16 %v1961_v34, %v1961_v34  ;;  %v4416_v39 = vpop.xlane.xlu0 %1800 }
 0x481   : > { %1840 = vadd.xlane.f32.xlu2 %v4392_v27  ;;  %v4399_v14 = vunpack.c.l.b16 %v2043_v50 }
 0x482   : > { %v4411_v7 = vunpack.c.l.b16 %v2029_v17 }
 0x483   : > { %4797 = vst [vmem:[#allocation42_spill] sm:$0xff] %v4399_v14 }
 0x484   : > { %v3026_v28 = vpop.eup %3025 }
 0x485   : > { %520 = vperm.xlu0 %2845, %v3111_v49   ;;  %v1825_v59 = vpop.xlane.xlu1 %1824  ;;  %v1960_v9 = vmul.f32 %v3026_v28, %v4160_v25  ;;  %v3028_v12 = vpop.eup %3027  ;;  %v4799_v28 = vmov 3  }
 0x486   : > { %3029 = vrcp.f32 %v1825_v59  ;;  %v1977_v48 = vmul.f32 %v3028_v12, %v4798_v35  ;;  %v3112_v59 = vld [vmem:[%s4636_s4 + $0x38] sm:$0xff]  ;;  %v1773_v12 = vpop.xlane.xlu2 %1772 }
 0x487   : > { %v2028_v5 = vpack.c.bf16 %v1960_v9, %v1960_v9  ;;  %3031 = vrcp.f32 %v4211_v53  ;;  %v3114_v53 = vld [vmem:[%s4636_s4 + $0x50] sm:$0xff] }
 0x488   : > { %v2045_v34 = vpack.c.bf16 %v1977_v48, %v1977_v48  ;;  %v1863_v48 = vpop.xlane.xlu0 %1862 }
 0x489   : > { %v4409_v50 = vunpack.c.l.b16 %v2028_v5 }
 0x48a   : > { %v4428_v17 = vunpack.c.l.b16 %v2045_v34 }
 0x48c   : > { %v3030_v11 = vpop.eup %3029 }
 0x48d   : > { %v4418_v49 = vpop.xlane.xlu1 %1796  ;;  %v1976_v25 = vmul.f32 %v3030_v11, %v4170_v26  ;;  %2848 = vset.pattern.permute.xlu0 %v4799_v28  ;;  %v3113_v26 = vld [vmem:[%s4636_s4 + $0x58] sm:$0xff]  ;;  %v3032_v27 = vpop.eup %3031 }
 0x48e   : > { %2331 = vperm.xlu0 %2848, %v3112_v59  }
 0x48f   : > { %v2044_v35 = vpack.c.bf16 %v1976_v25, %v1976_v25  ;;  %v4801_v25 = vld [vmem:[#allocation50_spill] sm:$0xff] }
 0x490   : > { %v1992_v34 = vmul.f32 %v3032_v27, %v4801_v25 }
 0x491   : > { %v4426_v9 = vunpack.c.l.b16 %v2044_v35  ;;  %v1803_v35 = vpop.xlane.xlu2 %1802 }
 0x493   : > { %4800 = vst [vmem:[#allocation17_spill] sm:$0xff] %v4426_v9  ;;  %528 = vperm.xlu1 %2680, %v3113_v26   ;;  %v3115_v26 = vld [vmem:[%s4636_s4 + $0x28] sm:$0xff] }
 0x495   : > { %v1859_v5 = vpop.xlane.xlu1 %1858 }
 0x496   : > { %3033 = vrcp.f32 %v1859_v5 }
 0x497   : > { %3035 = vrcp.f32 %v1863_v48  ;;  %v2060_v48 = vpack.c.bf16 %v1992_v34, %v1992_v34 }
 0x499   : > { %524 = vperm.xlu2 %2677, %v3114_v53   ;;  %v4445_v27 = vunpack.c.l.b16 %v2060_v48 }
 0x49b   : > { %2847 = vset.pattern.permute.xlu1 %v4799_v28 }
 0x49c   : > { %v3034_v59 = vpop.eup %3033  ;;  %2323 = vperm.xlu1 %2847, %v3115_v26   ;;  %v1865_v44 = vpop.xlane.xlu0 %1864  ;;  %v3116_v26 = vld [vmem:[%s4636_s4 + $0x20] sm:$0xff] }
 0x49d   : > { %v1861_v11 = vpop.xlane.xlu1 %1860  ;;  %v1993_v5 = vmul.f32 %v3034_v59, %v4192_v37  ;;  %v3036_v56 = vpop.eup %3035 }
 0x49e   : > { %3037 = vrcp.f32 %v1861_v11  ;;  %v1995_v53 = vmul.f32 %v3036_v56, %v4158_v33 }
 0x49f   : > { %v2061_v57 = vpack.c.bf16 %v1993_v5, %v1993_v5  ;;  %3039 = vrcp.f32 %v1865_v44 }
 0x4a0   : > { %v2063_v56 = vpack.c.bf16 %v1995_v53, %v1995_v53  ;;  %3041 = vrcp.f32 %v1833_v52 }
 0x4a1   : > { %v4447_v25 = vunpack.c.l.b16 %v2061_v57  ;;  %2846 = vset.pattern.permute.xlu2 %v4799_v28 }
 0x4a2   : > { %2319 = vperm.xlu2 %2846, %v3116_v26   ;;  %v4460_v28 = vunpack.c.l.b16 %v2063_v56  ;;  %v3117_v26 = vld [vmem:[%s4636_s4 + $0x30] sm:$0xff] }
 0x4a4   : > { %v3038_v34 = vpop.eup %3037  ;;  %v4455_v11 = vpop.xlane.xlu2 %1836 }
 0x4a5   : > { %v1771_v59 = vpop.xlane.xlu1 %1770  ;;  %v1994_v33 = vmul.f32 %v3038_v34, %v4204_v51  ;;  %v1805_v48 = vpop.xlane.xlu0 %1804 }
 0x4a6   : > { %3043 = vrcp.f32 %v1805_v48  ;;  %v3040_v53 = vpop.eup %3039 }
 0x4a7   : > { %v2062_v5 = vpack.c.bf16 %v1994_v33, %v1994_v33  ;;  %v3042_v44 = vpop.eup %3041  ;;  %v1996_v52 = vmul.f32 %v3040_v53, %v4202_v0 }
 0x4a8   : > { %v1980_v34 = vmul.f32 %v3042_v44, %v4147_v43 }
 0x4a9   : > { %v4458_v57 = vunpack.c.l.b16 %v2062_v5  ;;  %v2064_v31 = vpack.c.bf16 %v1996_v52, %v1996_v52 }
 0x4aa   : > { %2327 = vperm.xlu2 %2846, %v3117_v26  }
 0x4ab   : > { %v4475_v53 = vunpack.c.l.b16 %v2064_v31 }
 0x4ac   : > { %v1867_v14 = vpop.xlane.xlu2 %1866  ;;  %v3044_v33 = vpop.eup %3043 }
 0x4ad   : > { %v1835_v51 = vpop.xlane.xlu1 %1834  ;;  %3045 = vrcp.f32 %v1867_v14  ;;  %v1966_v43 = vmul.f32 %v3044_v33, %v4214_v61 }
 0x4ae   : > { %3047 = vrcp.f32 %v1835_v51 }
 0x4af   : > { %3049 = vrcp.f32 %v1773_v12  ;;  %v2048_v12 = vpack.c.bf16 %v1980_v34, %v1980_v34  ;;  %v2034_v34 = vpack.c.bf16 %v1966_v43, %v1966_v43 }
 0x4b0   : > { %3051 = vrcp.f32 %v1803_v35 }
 0x4b1   : > { %3053 = vrcp.f32 %v1771_v59 }
 0x4b3   : > { %v3046_v56 = vpop.eup %3045 }
 0x4b4   : > { %v1807_v5 = vpop.xlane.xlu2 %1806  ;;  %v3048_v26 = vpop.eup %3047  ;;  %v1997_v48 = vmul.f32 %v3046_v56, %v4228_v58 }
 0x4b5   : > { %3055 = vrcp.f32 %v1807_v5  ;;  %v1775_v37 = vpop.xlane.xlu1 %1774  ;;  %v3050_v9 = vpop.eup %3049  ;;  %v1981_v14 = vmul.f32 %v3048_v26, %v4231_v13 }
 0x4b6   : > { %3057 = vrcp.f32 %v1775_v37  ;;  %v2065_v0 = vpack.c.bf16 %v1997_v48, %v1997_v48  ;;  %v3052_v59 = vpop.eup %3051  ;;  %v1950_v51 = vmul.f32 %v3050_v9, %v4167_v36  ;;  %v4479_v37 = vunpack.c.l.b16 %v2048_v12 }
 0x4b7   : > { %3059 = vrcp.f32 %v4416_v39  ;;  %v2049_v35 = vpack.c.bf16 %v1981_v14, %v1981_v14  ;;  %v3054_v44 = vpop.eup %3053  ;;  %v1965_v26 = vmul.f32 %v3052_v59, %v4177_v16 }
 0x4b8   : > { %3061 = vrcp.f32 %v4283_v41  ;;  %v4477_v58 = vunpack.c.l.b16 %v2065_v0  ;;  %v2018_v33 = vpack.c.bf16 %v1950_v51, %v1950_v51  ;;  %v1949_v14 = vmul.f32 %v3054_v44, %v4218_v62 }
 0x4b9   : > { %v4481_v13 = vunpack.c.l.b16 %v2049_v35  ;;  %3063 = vrcp.f32 %v4418_v49  ;;  %v2033_v51 = vpack.c.bf16 %v1965_v26, %v1965_v26 }
 0x4ba   : > { %v2289_v39 = vpack.c.b16 %v4477_v58, %v4475_v53  ;;  %3065 = vrcp.f32 %v4403_v20  ;;  %v2098_v43 = vunpack.c.l.b16 %v2018_v33  ;;  %v2017_v36 = vpack.c.bf16 %v1949_v14, %v1949_v14  ;;  %v4823_v58 = vld [vmem:[#allocation26_spill] sm:$0xff] }
 0x4bb   : > { %v3056_v52 = vpop.eup %3055  ;;  %v2158_v62 = vunpack.c.l.b16 %v2033_v51  ;;  %v4822_v53 = vpack.c.b16 %v4336_v29, %v4334_v23  ;;  %v4826_v23 = vld [vmem:[#allocation17_spill] sm:$0xff] }
 0x4bc   : > { %v3058_v41 = vpop.eup %3057  ;;  %v1967_v61 = vmul.f32 %v3056_v52, %v4241_v55  ;;  %v2159_v55 = vunpack.c.l.b16 %v2034_v34  ;;  %v1747_v52 = vpop.xlane.xlu0 %1746  ;;  %v2097_v34 = vunpack.c.l.b16 %v2017_v36  ;;  %v4827_v29 = vpack.c.b16 %v4428_v17, %v4826_v23 }
 0x4bd   : > { %v3060_v31 = vpop.eup %3059  ;;  %v1951_v9 = vmul.f32 %v3058_v41, %v4247_v8  ;;  %v4497_v14 = vpop.xlane.xlu2 %1854  ;;  %3067 = vrcp.f32 %v1747_v52 }
 0x4be   : > { %v3062_v56 = vpop.eup %3061  ;;  %v2035_v5 = vpack.c.bf16 %v1967_v61, %v1967_v61  ;;  %v1964_v0 = vmul.f32 %v3060_v31, %v4134_v42 }
 0x4bf   : > { %v2019_v48 = vpack.c.bf16 %v1951_v9, %v1951_v9  ;;  %v1948_v49 = vmul.f32 %v3062_v56, %v4099_v38  ;;  %v3064_v41 = vpop.eup %3063 }
 0x4c0   : > { %v2160_v12 = vunpack.c.l.b16 %v2035_v5  ;;  %v2032_v16 = vpack.c.bf16 %v1964_v0, %v1964_v0  ;;  %v3066_v20 = vpop.eup %3065  ;;  %v1962_v44 = vmul.f32 %v3064_v41, %v4183_v1 }
 0x4c1   : > { %v2099_v35 = vunpack.c.l.b16 %v2019_v48  ;;  %v2016_v59 = vpack.c.bf16 %v1948_v49, %v1948_v49  ;;  %v1963_v31 = vmul.f32 %v3066_v20, %v4109_v22  ;;  %v4802_v22 = vpack.c.b16 %v4245_v60, %v4243_v3 }
 0x4c2   : > { %v2168_v8 = vpack.c.b16 %v2160_v12, %v2159_v55  ;;  %v2157_v42 = vunpack.c.l.b16 %v2032_v16  ;;  %v2030_v56 = vpack.c.bf16 %v1962_v44, %v1962_v44  ;;  %v1745_v55 = vpop.xlane.xlu1 %1744  ;;  %v4804_v49 = vpack.c.b16 %v4181_v24, %v4179_v54 }
 0x4c3   : > { %v2107_v61 = vpack.c.b16 %v2099_v35, %v2098_v43  ;;  %v2096_v9 = vunpack.c.l.b16 %v2016_v59  ;;  %v2031_v26 = vpack.c.bf16 %v1963_v31, %v1963_v31  ;;  %v4803_v35 = vpack.c.b16 %v4411_v7, %v4409_v50  ;;  %v3068_v54 = vpop.eup %3067  ;;  %v4811_v31 = vld [vmem:[#allocation58_spill] sm:$0xff] }
 0x4c4   : > { %2177 = vmatpush.bf16.xpose.msrb.mxu3 %v2168_v8  ;;  %v1869_v38 = vpop.xlane.xlu0 %1868  ;;  %v2167_v33 = vpack.c.b16 %v2158_v62, %v2157_v42  ;;  %v2155_v48 = vunpack.c.l.b16 %v2030_v56  ;;  %3069 = vrcp.f32 %v1745_v55  ;;  %v4805_v3 = vpack.c.b16 %v4385_v21, %v4383_v10  ;;  %v4813_v56 = vld [vmem:[#allocation53_spill] sm:$0xff] }
 0x4c5   : > { %2116 = vmatpush.bf16.xpose.msrb.mxu2 %v2107_v61  ;;  %v2106_v5 = vpack.c.b16 %v2097_v34, %v2096_v9  ;;  %v2156_v12 = vunpack.c.l.b16 %v2031_v26  ;;  %v4806_v60 = vpack.c.b16 %v4369_v46, %v4367_v47  ;;  %v4807_v10 = vpack.c.b16 %v4083_v18, %v4091_v6  ;;  %v4809_v34 = vld [vmem:[#allocation29_spill] sm:$0xff]  ;;  %v4810_v6 = vld [vmem:[#allocation59_spill] sm:$0xff] }
 0x4c6   : > { %v4808_v47 = vpack.c.b16 %v4345_v30, %v4343_v4  ;;  %v1937_v42 = vmul.f32 %v3068_v54, %v4810_v6  ;;  %v4816_v54 = vld [vmem:[#allocation9_spill] sm:$0xff] }
 0x4c7   : > { %v2166_v0 = vpack.c.b16 %v2156_v12, %v2155_v48 }
 0x4c8   : > { %v2005_v26 = vpack.c.bf16 %v1937_v42, %v1937_v42 }
 0x4ca   : > { %v1839_v36 = vpop.xlane.xlu1 %1838  ;;  %v3070_v50 = vpop.eup %3069 }
 0x4cb   : > { %3071 = vrcp.f32 %v1839_v36 }
 0x4cc   : > { %2178 = vmatpush.bf16.xpose.msrb.mxu3 %v2167_v33  ;;  %v4499_v43 = vpop.xlane.xlu0 %1816  ;;  %v1871_v1 = vpop.xlane.xlu2 %1870 }
 0x4cd   : > { %2117 = vmatpush.bf16.xpose.msrb.mxu2 %v2106_v5 }
 0x4d1   : > { %v3072_v7 = vpop.eup %3071 }
 0x4d2   : > { %v1779_v41 = vpop.xlane.xlu1 %1778  ;;  %v1983_v62 = vmul.f32 %v3072_v7, %v4273_v2  ;;  %v4817_v7 = vld [vmem:[#allocation28_spill] sm:$0xff] }
 0x4d4   : > { %2179 = vmatpush.bf16.xpose.msrb.mxu3 %v2166_v0  ;;  %v4510_v8 = vpop.xlane.xlu0 %1850  ;;  %v1777_v51 = vpop.xlane.xlu2 %1776  ;;  %v2051_v33 = vpack.c.bf16 %v1983_v62, %v1983_v62  ;;  %v4821_v62 = vpack.c.b16 %v4460_v28, %v4458_v57  ;;  %v4825_v28 = vpack.c.b16 %v4447_v25, %v4445_v27  ;;  %v4831_v25 = vld [vmem:[#allocation10_spill] sm:$0xff] }
 0x4d5   : > { %2118 = vmatpush.bf16.xpose.msrb.mxu2 %v4802_v22  ;;  %3073 = vrcp.f32 %v1777_v51 }
 0x4d6   : > { %3075 = vrcp.f32 %v1871_v1  ;;  %v2221_v22 = vunpack.c.l.b16 %v2051_v33  ;;  %v4830_v33 = vld [vmem:[#allocation18_spill] sm:$0xff] }
 0x4d7   : > { %3077 = vrcp.f32 %v1779_v41 }
 0x4d8   : > { %3079 = vrcp.f32 %v1869_v38 }
 0x4d9   : > { %3081 = vrcp.f32 %v4455_v11  ;;  %v1936_v11 = vmul.f32 %v3070_v50, %v4259_v15 }
 0x4da   : > { %3083 = vrcp.f32 %v4497_v14 }
 0x4db   : > { %v3074_v52 = vpop.eup %3073 }
 0x4dc   : > { %2180 = vmatpush.bf16.xpose.msrb.mxu3 %v4803_v35  ;;  %v4518_v24 = vpop.xlane.xlu0 %1844  ;;  %v3076_v61 = vpop.eup %3075  ;;  %v1952_v16 = vmul.f32 %v3074_v52, %v4303_v63  ;;  %v2004_v63 = vpack.c.bf16 %v1936_v11, %v1936_v11  ;;  %v2085_v35 = vunpack.c.l.b16 %v2005_v26  ;;  %v4818_v52 = vld [vmem:[#allocation8_spill] sm:$0xff] }
 0x4dd   : > { %2119 = vmatpush.bf16.xpose.msrb.mxu2 %v4804_v49  ;;  %v3078_v21 = vpop.eup %3077  ;;  %v1999_v59 = vmul.f32 %v3076_v61, %v4287_v19  ;;  %v4812_v19 = vpack.c.b16 %v4318_v40, %v4316_v32  ;;  %v606_v61 = vadd.f32 %v4818_v52, %v4817_v7 }
 0x4de   : > { %v3080_v46 = vpop.eup %3079  ;;  %v1953_v44 = vmul.f32 %v3078_v21, %v4290_v45  ;;  %v2020_v30 = vpack.c.bf16 %v1952_v16, %v1952_v16  ;;  %v4814_v45 = vld [vmem:[#allocation52_spill] sm:$0xff]  ;;  %v2084_v0 = vunpack.c.l.b16 %v2004_v63 }
 0x4df   : > { %v3082_v20 = vpop.eup %3081  ;;  %v1998_v18 = vmul.f32 %v3080_v46, %v4809_v34  ;;  %v2067_v38 = vpack.c.bf16 %v1999_v59, %v1999_v59  ;;  %v4815_v5 = vpack.c.b16 %v4813_v56, %v4814_v45  ;;  %v4819_v46 = vpack.c.b16 %v4481_v13, %v4479_v37 }
 0x4e0   : > { %v1982_v9 = vmul.f32 %v3082_v20, %v4811_v31  ;;  %v2021_v15 = vpack.c.bf16 %v1953_v44, %v1953_v44  ;;  %v2145_v55 = vunpack.c.l.b16 %v2020_v30  ;;  %v2100_v32 = vpack.c.b16 %v2085_v35, %v2084_v0  ;;  %v4820_v20 = vld [vmem:[#allocation57_spill] sm:$0xff]  ;;  %v3084_v11 = vpop.eup %3083  ;;  %v4833_v0 = vld [vmem:[#allocation55_spill] sm:$0xff] }
 0x4e1   : > { %v2066_v2 = vpack.c.bf16 %v1998_v18, %v1998_v18  ;;  %v2282_v12 = vunpack.c.l.b16 %v2067_v38  ;;  %3085 = vrcp.f32 %v4820_v20  ;;  %v1991_v37 = vmul.f32 %v3084_v11, %v4823_v58  ;;  %v4829_v38 = vld [vmem:[#allocation37_spill] sm:$0xff] }
 0x4e2   : > { %v2050_v48 = vpack.c.bf16 %v1982_v9, %v1982_v9  ;;  %v2146_v1 = vunpack.c.l.b16 %v2021_v15  ;;  %3087 = vrcp.f32 %v4510_v8  ;;  %v4828_v9 = vld [vmem:[#allocation22_spill] sm:$0xff] }
 0x4e3   : > { %v2281_v36 = vunpack.c.l.b16 %v2066_v2  ;;  %v2059_v18 = vpack.c.bf16 %v1991_v37, %v1991_v37  ;;  %v4840_v37 = vld [vmem:[#allocation47_spill] sm:$0xff] }
 0x4e4   : > { %2181 = vmatpush.bf16.xpose.msrb.mxu3 %v4805_v3  ;;  %v4535_v4 = vpop.xlane.xlu0 %1810  ;;  %v2220_v49 = vunpack.c.l.b16 %v2050_v48  ;;  %v2161_v41 = vpack.c.b16 %v2146_v1, %v2145_v55 }
 0x4e5   : > { %2120 = vmatpush.bf16.xpose.msrb.mxu2 %v4806_v60  ;;  %v2290_v40 = vpack.c.b16 %v2282_v12, %v2281_v36  ;;  %v1819_v60 = vpop.xlane.xlu2 %1818 }
 0x4e6   : > { %v2229_v3 = vpack.c.b16 %v2221_v22, %v2220_v49 }
 0x4e7   : > { %v3086_v44 = vpop.eup %3085 }
 0x4e8   : > { %v3088_v34 = vpop.eup %3087 }
 0x4e9   : > { %v1989_v63 = vmul.f32 %v3088_v34, %v4829_v38 }
 0x4eb   : > { %v2057_v17 = vpack.c.bf16 %v1989_v63, %v1989_v63 }
 0x4ec   : > { %2182 = vmatpush.bf16.xpose.msrb.mxu3 %v4807_v10  ;;  %v1849_v10 = vpop.xlane.xlu1 %1848 }
 0x4ed   : > { %2121 = vmatpush.bf16.xpose.msrb.mxu2 %v4808_v47  ;;  %v2000_v47 = vpack.c.bf16 %v606_v61, %v606_v61  ;;  %v1813_v16 = vpop.xlane.xlu2 %1812  ;;  %3089 = vrcp.f32 %v1849_v10  ;;  %v2272_v49 = vunpack.c.l.b16 %v2057_v17 }
 0x4ee   : > { %3091 = vrcp.f32 %v1819_v60 }
 0x4ef   : > { %3093 = vrcp.f32 %v4499_v43  ;;  %v2274_v43 = vunpack.c.l.b16 %v2059_v18 }
 0x4f3   : > { %v3090_v6 = vpop.eup %3089 }
 0x4f4   : > { %2183 = vmatpush.bf16.xpose.msrb.mxu3 %v4812_v19  ;;  %v1815_v59 = vpop.xlane.xlu1 %1814  ;;  %v3092_v57 = vpop.eup %3091  ;;  %v1988_v30 = vmul.f32 %v3090_v6, %v4828_v9 }
 0x4f5   : > { %2122 = vmatpush.bf16.xpose.msrb.mxu2 %v4815_v5  ;;  %v1847_v13 = vpop.xlane.xlu2 %1846  ;;  %v3094_v31 = vpop.eup %3093  ;;  %v1973_v19 = vmul.f32 %v3092_v57, %v4830_v33 }
 0x4f6   : > { %3095 = vrcp.f32 %v1847_v13  ;;  %v1972_v15 = vmul.f32 %v3094_v31, %v4831_v25  ;;  %v2056_v45 = vpack.c.bf16 %v1988_v30, %v1988_v30  ;;  %v4843_v25 = vld [vmem:[#allocation13_spill] sm:$0xff] }
 0x4f7   : > { %v521_v51 = vpop.permute.xlu0 %520  ;;  %3097 = vrcp.f32 %v1813_v16  ;;  %v2041_v26 = vpack.c.bf16 %v1973_v19, %v1973_v19 }
 0x4f8   : > { %v608_v50 = vadd.f32 %v4816_v54, %v521_v51  ;;  %3099 = vrcp.f32 %v4518_v24  ;;  %v4832_v24 = vld [vmem:[#allocation42_spill] sm:$0xff]  ;;  %v2040_v1 = vpack.c.bf16 %v1972_v15, %v1972_v15  ;;  %v2271_v35 = vunpack.c.l.b16 %v2056_v45  ;;  %v4835_v51 = vld [vmem:[#allocation25_spill] sm:$0xff] }
 0x4f9   : > { %3101 = vrcp.f32 %v1815_v59  ;;  %v4834_v22 = vpack.c.b16 %v4832_v24, %v4833_v0 }
 0x4fa   : > { %v2001_v21 = vpack.c.bf16 %v608_v50, %v608_v50  ;;  %3103 = vrcp.f32 %v4535_v4  ;;  %v4837_v4 = vld [vmem:[#allocation32_spill] sm:$0xff]  ;;  %v2210_v54 = vunpack.c.l.b16 %v2040_v1  ;;  %v2285_v61 = vpack.c.b16 %v2272_v49, %v2271_v35 }
 0x4fb   : > { %v4838_v50 = vld [vmem:[#allocation56_spill] sm:$0xff] }
 0x4fc   : > { %2184 = vmatpush.bf16.xpose.msrb.mxu3 %v2161_v41  ;;  %v1809_v8 = vpop.xlane.xlu1 %1808  ;;  %v3096_v5 = vpop.eup %3095  ;;  %v2606_v1 = vld [vmem:[%s4635_s3 + $0x60] sm:$0xff] }
 0x4fd   : > { %2123 = vmatpush.bf16.xpose.msrb.mxu2 %v2100_v32  ;;  %v1841_v2 = vpop.xlane.xlu2 %1840  ;;  %v3098_v48 = vpop.eup %3097  ;;  %v1987_v41 = vmul.f32 %v3096_v5, %v4835_v51  ;;  %v2211_v32 = vunpack.c.l.b16 %v2041_v26 }
 0x4fe   : > { %v3100_v12 = vpop.eup %3099  ;;  %3105 = vrcp.f32 %v1841_v2  ;;  %v4844_v2 = vld [vmem:[#allocation12_spill] sm:$0xff] }
 0x4ff   : > { %v3102_v36 = vpop.eup %3101  ;;  %3107 = vrcp.f32 %v1809_v8  ;;  %v1986_v60 = vmul.f32 %v3100_v12, %v4837_v4  ;;  %v2055_v10 = vpack.c.bf16 %v1987_v41, %v1987_v41  ;;  %v4842_v8 = vld [vmem:[#allocation43_spill] sm:$0xff] }
 0x500   : > { %v1971_v7 = vmul.f32 %v3102_v36, %v4838_v50  ;;  %v3104_v52 = vpop.eup %3103  ;;  %v2607_v36 = vld [vmem:[%s4635_s3 + $0x68] sm:$0xff] }
 0x501   : > { %v2054_v20 = vpack.c.bf16 %v1986_v60, %v1986_v60  ;;  %v2332_v60 = vpop.permute.xlu0 %2331 }
 0x502   : > { %v2039_v11 = vpack.c.bf16 %v1971_v7, %v1971_v7 }
 0x503   : > { %2185 = vmatmul.bf16.vlgmr.msrb.gmra.mxu3 %v2001_v21  ;;  %v2269_v34 = vunpack.c.l.b16 %v2054_v20 }
 0x504   : > { %2299 = vmatpush.bf16.xpose.msra.mxu3 %v2290_v40  ;;  %2124 = vmatmul.bf16.vlgmr.msrb.gmra.mxu2 %v2000_v47  ;;  %v1843_v55 = vpop.xlane.xlu1 %1842  ;;  %v4836_v40 = vld [vmem:[#allocation11_spill] sm:$0xff]  ;;  %v3106_v21 = vpop.eup %3105  ;;  %v2224_v47 = vpack.c.b16 %v2211_v32, %v2210_v54  ;;  %v2209_v6 = vunpack.c.l.b16 %v2039_v11 }
 0x505   : > { %2238 = vmatpush.bf16.xpose.msra.mxu2 %v2229_v3  ;;  %3109 = vrcp.f32 %v1843_v55  ;;  %v1970_v3 = vmul.f32 %v3098_v48, %v4836_v40  ;;  %v3108_v16 = vpop.eup %3107  ;;  %v525_v19 = vpop.permute.xlu2 %524 }
 0x506   : > { %v1968_v13 = vmul.f32 %v3108_v16, %v4840_v37 }
 0x508   : > { %v2036_v23 = vpack.c.bf16 %v1968_v13, %v1968_v13 }
 0x50a   : > { %v2206_v9 = vunpack.c.l.b16 %v2036_v23 }
 0x50b   : > { %v3110_v59 = vpop.eup %3109 }
 0x50c   : > { %2300 = vmatpush.bf16.xpose.msra.mxu3 %v2289_v39  ;;  %v4824_v39 = vld [vmem:[#allocation49_spill] sm:$0xff]  ;;  %v1985_v18 = vmul.f32 %v3110_v59, %v4842_v8  ;;  %v529_v63 = vpop.permute.xlu1 %528 }
 0x50d   : > { %2239 = vmatpush.bf16.xpose.msra.mxu2 %v4819_v46  ;;  %v1990_v14 = vmul.f32 %v3086_v44, %v4824_v39  ;;  %v2038_v46 = vpack.c.bf16 %v1970_v3, %v1970_v3  ;;  %v4839_v44 = vld [vmem:[#allocation27_spill] sm:$0xff]  ;;  %v4841_v39 = vld [vmem:[#allocation38_spill] sm:$0xff]  ;;  %v613_v15 = vadd.f32 %v4843_v25, %v529_v63  ;;  %v2320_v51 = vpop.permute.xlu2 %2319 }
 0x50e   : > { %v2053_v31 = vpack.c.bf16 %v1985_v18, %v1985_v18 }
 0x50f   : > { %v2058_v42 = vpack.c.bf16 %v1990_v14, %v1990_v14  ;;  %v2208_v58 = vunpack.c.l.b16 %v2038_v46  ;;  %v1969_v14 = vmul.f32 %v3104_v52, %v4841_v39  ;;  %v2003_v45 = vpack.c.bf16 %v613_v15, %v613_v15 }
 0x510   : > { %v2268_v38 = vunpack.c.l.b16 %v2053_v31 }
 0x511   : > { %v2273_v27 = vunpack.c.l.b16 %v2058_v42  ;;  %v2223_v42 = vpack.c.b16 %v2209_v6, %v2208_v58 }
 0x513   : > { %v2286_v56 = vpack.c.b16 %v2274_v43, %v2273_v27 }
 0x514   : > { %2301 = vmatpush.bf16.xpose.msra.mxu3 %v4821_v62  ;;  %v2270_v62 = vunpack.c.l.b16 %v2055_v10  ;;  %v2324_v54 = vpop.permute.xlu1 %2323 }
 0x515   : > { %2240 = vmatpush.bf16.xpose.msra.mxu2 %v4822_v53  ;;  %v1984_v53 = vmul.f32 %v3106_v21, %v4839_v44  ;;  %v2328_v41 = vpop.permute.xlu2 %2327 }
 0x516   : > { %v2284_v57 = vpack.c.b16 %v2270_v62, %v2269_v34 }
 0x51c   : > { %2302 = vmatpush.bf16.xpose.msra.mxu3 %v4825_v28  ;;  %v2052_v28 = vpack.c.bf16 %v1984_v53, %v1984_v53 }
 0x51d   : > { %2241 = vmatpush.bf16.xpose.msra.mxu2 %v4827_v29  ;;  %v2037_v29 = vpack.c.bf16 %v1969_v14, %v1969_v14 }
 0x51e   : > { %v2267_v43 = vunpack.c.l.b16 %v2052_v28 }
 0x51f   : > { %v2207_v30 = vunpack.c.l.b16 %v2037_v29 }
 0x520   : > { %v2283_v33 = vpack.c.b16 %v2268_v38, %v2267_v43 }
 0x521   : > { %v2222_v27 = vpack.c.b16 %v2207_v30, %v2206_v9 }
 0x524   : > { %2303 = vmatpush.bf16.xpose.msra.mxu3 %v2286_v56  ;;  %v611_v56 = vadd.f32 %v4844_v2, %v525_v19 }
 0x525   : > { %2242 = vmatpush.bf16.xpose.msra.mxu2 %v4834_v22 }
 0x526   : > { %v2002_v17 = vpack.c.bf16 %v611_v56, %v611_v56 }
 0x52c   : > { %2304 = vmatpush.bf16.xpose.msra.mxu3 %v2285_v61 }
 0x52d   : > { %2243 = vmatpush.bf16.xpose.msra.mxu2 %v2224_v47 }
 0x534   : > { %2305 = vmatpush.bf16.xpose.msra.mxu3 %v2284_v57 }
 0x535   : > { %2244 = vmatpush.bf16.xpose.msra.mxu2 %v2223_v42 }
 0x53c   : > { %2306 = vmatpush.bf16.xpose.msra.mxu3 %v2283_v33 }
 0x53d   : > { %2245 = vmatpush.bf16.xpose.msra.mxu2 %v2222_v27 }
 0x543   : > { %2307 = vmatmul.bf16.vlgmr.msra.gmra.mxu3 %v2003_v45 }
 0x544   : > { %2246 = vmatmul.bf16.vlgmr.msra.gmra.mxu2 %v2002_v17 }
 0x586   : > { %v2186_v5 = vpop.f32.mrf.mxu3 }
 0x587   : > { %v2125_v26 = vpop.f32.mrf.mxu2 }
 0x588   : > { %v2316_v22 = vpack.c.bf16 %v2186_v5, %v2125_v26 }
 0x58e   : > { %v2188_v48 = vpop.f32.mrf.mxu3 }
 0x58f   : > { %v2127_v55 = vpop.f32.mrf.mxu2 }
 0x5c6   : > { %v2308_v12 = vpop.f32.mrf.mxu3 }
 0x5c7   : > { %v2247_v24 = vpop.f32.mrf.mxu2 }
 0x5c8   : > { %v2317_v0 = vpack.c.bf16 %v2308_v12, %v2247_v24 }
 0x5ca   : > { %2356 = vmatpush.bf16.msrb.mxu2 %v2317_v0  ;;  %2609 = vmatpush.bf16.msrb.mxu3 %v2317_v0 }
 0x5ce   : > { %v2310_v35 = vpop.f32.mrf.mxu3  ;;  %2357 = vmatpush.bf16.msrb.mxu2 %v2316_v22  ;;  %2610 = vmatpush.bf16.msrb.mxu3 %v2316_v22 }
 0x5cf   : > { %v2249_v49 = vpop.f32.mrf.mxu2 }
 0x5d1   : > { %2585 = vmatmul.msk.bf16.vlgmr.msrb.gmra.mxu2 %vm561_vm7, %v2606_v1  ;;  %2586 = vmatmul.msk.bf16.vlgmr.msrb.gmra.mxu3 %vm561_vm7, %v2607_v36 }
 0x654   : > { %v2359_v32 = vpop.f32.mrf.mxu2  ;;  %v2364_v40 = vpop.f32.mrf.mxu3 }
 0x655   : > { %v2360_v3 = vadd.f32 %v2359_v32, %v2320_v51  ;;  %v2365_v4 = vadd.f32 %v2364_v40, %v2328_v41 }
 0x657   : > { %2369 = vst [vmem:[%s259_s28] sm:$0xff] %v2360_v3 }
 0x658   : > { %2371 = vst [vmem:[%s259_s28 + $0x10] sm:$0xff] %v2365_v4 }
 0x65c   : > { %v2361_v50 = vpop.f32.mrf.mxu2  ;;  %v2366_v7 = vpop.f32.mrf.mxu3 }
 0x65d   : > { %v2367_v52 = vadd.f32 %v2366_v7, %v2332_v60  ;;  %v2362_v61 = vadd.f32 %v2361_v50, %v2324_v54 }
 0x65f   : > { %2372 = vst [vmem:[%s259_s28 + $0x18] sm:$0xff] %v2367_v52 }
 0x660   : > { %2370 = vst [vmem:[%s259_s28 + $0x8] sm:$0xff] %v2362_v61 }
 0x661   : > { %3175 = shalt.err (!%p3172_p7)
}
 0x662   : > { %s3223_s12 = smov 128   ;;  %s3224_s26 = smov 8  }
 0x663   : > { %2613 = dma.vmem_to_hbm [thread:$0]  (%p3305_p11), %s2387_s11, 512, %s2389_s23, %s2374_s22, %s3223_s12, %s3223_s12, %s3224_s26  }
 0x664 PF: > { %s2403_s8 = sand.u32 1, %s3202_s18   ;;  %p4845_p5 = scmp.ge.s32.totalorder %s3214_s21, 2 }
 0x665   : > { %s2404_s28 = scalar_lea.sflag [#allocation4], %s2403_s8 }
 0x666   : > { %p2620_p8 = pnand %p4845_p5, %p3309_p12 }
 0x668   : > { %p2621_p10 = pneg %p2620_p8 }
 0x66a   : > { %3197 = dma.done.wait (%p2621_p10), %s2404_s28, 512  }
 0x66b   : > { %3199 = vsyncadd (%p2621_p10), %s2404_s28, 4294966784  ;;  %p18_p2 = scmp.ge.s32.totalorder %s3280_s24, 4   ;;  %s4846_s18 = smov %s3206_s19 }
 0x66c   : > { %s4847_s19 = smov %s3210_s20  ;;  %s4848_s20 = smov %s3292_s27 }
 0x66d   : > { %s4849_s21 = smov %s3280_s24  ;;  %20 = sbr.rel (!%p18_p2) target bundleno = 5 (0x5), region = 88 }
 0x672   :  { %2410 = vsyncpa [#allocation3], 1 }
 0x673   :  { %2412 = vsyncpa [#allocation3 + $0x1], 1 }
 0x674   :  { %2413 = vsyncpa [#allocation4], 1 }
 0x675   :  { %2415 = vsyncpa [#allocation4 + $0x1], 1 }

</bundles_post_ra>
